<compile_context>
chip_gen: v7x
topology: tpu7x:2x2x1
jax: 0.10.0
libtpu: 0.0.40
codegen_flags: <defaults>
</compile_context>

<pallas_src>
import functools

import jax
import jax.numpy as jnp
from jax.experimental import pallas as pl
from jax.experimental.pallas import tpu as pltpu


# ---------------------------------------------------------------------------
# Fused kernel: one (batch, head-group) step.
#   x_ref   : (N, D)            input rows for this batch element
#   wq/wk/wv: (D, hpb*dh)       column slabs of W_qkv for this head group
#   wo_ref  : (hpb*dh, D)       row slab of W_out for this head group
#   bo_ref  : (1, D)            output bias (resident)
#   out_ref : (N, D)            final output block (written on last group)
#   acc_ref : (N, D) f32 VMEM   output-projection accumulator across groups
# ---------------------------------------------------------------------------
def _fused_attention_kernel(x_ref, wq_ref, wk_ref, wv_ref, wo_ref, bo_ref,
                            out_ref, acc_ref, *, heads_per_block, dim_head,
                            scale):
    g = pl.program_id(1)
    n_groups = pl.num_programs(1)

    @pl.when(g == 0)
    def _():
        acc_ref[...] = jnp.zeros_like(acc_ref)

    # bf16 MXU inputs, f32 accumulation.
    xb = x_ref[...].astype(jnp.bfloat16)
    wq = wq_ref[...].astype(jnp.bfloat16)
    wk = wk_ref[...].astype(jnp.bfloat16)
    wv = wv_ref[...].astype(jnp.bfloat16)
    wo = wo_ref[...].astype(jnp.bfloat16)

    q = jnp.dot(xb, wq, preferred_element_type=jnp.float32)   # (N, hpb*dh)
    k = jnp.dot(xb, wk, preferred_element_type=jnp.float32)
    v = jnp.dot(xb, wv, preferred_element_type=jnp.float32)

    # Per-head attention inside the group (static unroll; heads_per_block is
    # small).  The per-head output is folded straight into the output
    # projection:  acc += o_h @ W_out[rows of head h]  ==  concat(o) @ W_out.
    for h in range(heads_per_block):
        sl = slice(h * dim_head, (h + 1) * dim_head)
        qh = q[:, sl].astype(jnp.bfloat16)
        kh = k[:, sl].astype(jnp.bfloat16)
        vh = v[:, sl].astype(jnp.bfloat16)

        # dots = q @ k^T * scale  (contract the head dim)
        s = jax.lax.dot_general(
            qh, kh, (((1,), (1,)), ((), ())),
            preferred_element_type=jnp.float32) * scale        # (N, N) f32

        # numerically-stable softmax over keys; divide on the EUP slot
        m = jnp.max(s, axis=-1, keepdims=True)
        p = jnp.exp(s - m)
        l = jnp.sum(p, axis=-1, keepdims=True)
        p = p * pl.reciprocal(l, approx=True)

        oh = jnp.dot(p.astype(jnp.bfloat16), vh,
                     preferred_element_type=jnp.float32)        # (N, dh)
        acc_ref[...] += jnp.dot(oh.astype(jnp.bfloat16), wo[sl, :],
                                preferred_element_type=jnp.float32)

    @pl.when(g == n_groups - 1)
    def _():
        out_ref[...] = (acc_ref[...]
                        + bo_ref[...].astype(jnp.float32)).astype(out_ref.dtype)


def _pick_heads_per_block(heads, dim_head, max_block_lanes=512):
    """Largest divisor of `heads` whose lane width (hpb*dim_head) <= 512."""
    best = 1
    for hpb in range(1, heads + 1):
        if heads % hpb == 0 and hpb * dim_head <= max_block_lanes:
            best = hpb
    return best


# ---------------------------------------------------------------------------
# Full Attention forward (mask=None path of the PyTorch module)
# ---------------------------------------------------------------------------
def attention_forward(x, w_qkv, w_out, b_out, *, heads, dim_head,
                      heads_per_block=None):
    """x: (B, N, dim) -> (B, N, dim)."""
    B, N, D = x.shape
    inner = heads * dim_head
    assert w_qkv.shape == (D, 3 * inner)
    assert w_out.shape == (inner, D)
    scale = float(D) ** -0.5            # matches PyTorch: self.scale = dim**-0.5

    if heads_per_block is None:
        heads_per_block = _pick_heads_per_block(heads, dim_head)
    assert heads % heads_per_block == 0
    hpb = heads_per_block
    G = heads // hpb                    # head groups (reduction axis for W_out)
    hd = hpb * dim_head                 # lane width of a head-group slab

    b_out2 = b_out.reshape(1, D)

    kernel = functools.partial(_fused_attention_kernel,
                               heads_per_block=hpb, dim_head=dim_head,
                               scale=scale)

    flops = (2 * B * N * D * 3 * inner              # qkv projection
             + 4 * B * heads * N * N * dim_head     # scores + attn @ v
             + 2 * B * N * inner * D)               # output projection
    bytes_accessed = 4 * (2 * B * N * D + 3 * D * inner + inner * D + D)

    # Column-slab indices into W_qkv for q / k / v of head-group g:
    #   q -> block g, k -> block G + g, v -> block 2G + g   (block width = hd)
    out = pl.pallas_call(
        kernel,
        out_shape=jax.ShapeDtypeStruct((B, N, D), x.dtype),
        grid_spec=pltpu.PrefetchScalarGridSpec(
            num_scalar_prefetch=0,
            grid=(B, G),
            in_specs=[
                pl.BlockSpec((None, N, D), lambda b, g: (b, 0, 0)),    # x rows
                pl.BlockSpec((D, hd), lambda b, g: (0, g)),            # Wq slab
                pl.BlockSpec((D, hd), lambda b, g: (0, G + g)),        # Wk slab
                pl.BlockSpec((D, hd), lambda b, g: (0, 2 * G + g)),    # Wv slab
                pl.BlockSpec((hd, D), lambda b, g: (g, 0)),            # Wout slab
                pl.BlockSpec((1, D), lambda b, g: (0, 0)),             # bias
            ],
            out_specs=pl.BlockSpec((None, N, D), lambda b, g: (b, 0, 0)),
            scratch_shapes=[pltpu.VMEM((N, D), jnp.float32)],
        ),
        compiler_params=pltpu.CompilerParams(
            dimension_semantics=("parallel", "arbitrary"),
            vmem_limit_bytes=32 * 1024 * 1024,     # safe on v7x's 64 MiB VMEM
        ),
        cost_estimate=pl.CostEstimate(
            flops=flops,
            transcendentals=B * heads * N * N,
            bytes_accessed=bytes_accessed,
        ),
    )(x, w_qkv, w_qkv, w_qkv, w_out, b_out2)
    return out


# ---------------------------------------------------------------------------
# Pure-JAX reference (same math as the PyTorch module, f32 / HIGHEST precision)
# ---------------------------------------------------------------------------
def attention_reference(x, w_qkv, w_out, b_out, *, heads, dim_head):
    B, N, D = x.shape
    inner = heads * dim_head
    scale = D ** -0.5
    hp = jax.lax.Precision.HIGHEST
    qkv = jnp.einsum('bnd,de->bne', x, w_qkv, precision=hp)
    qkv = qkv.reshape(B, N, 3, heads, dim_head).transpose(2, 0, 3, 1, 4)
    q, k, v = qkv[0], qkv[1], qkv[2]
    dots = jnp.einsum('bhid,bhjd->bhij', q, k, precision=hp) * scale
    attn = jax.nn.softmax(dots, axis=-1)
    o = jnp.einsum('bhij,bhjd->bhid', attn, v, precision=hp)
    o = o.transpose(0, 2, 1, 3).reshape(B, N, inner)
    return jnp.einsum('bne,ed->bnd', o, w_out, precision=hp) + b_out


if __name__ == "__main__":
    key = jax.random.PRNGKey(0)
    kx, kq, ko, kb = jax.random.split(key, 4)

    # Small but lane-dense shapes implied by the module's forward:
    #   x: (batch, seq, dim), dim a multiple of 128, heads*dim_head = 128.
    B, N, dim = 2, 128, 128
    heads, dim_head = 2, 64
    inner = heads * dim_head

    x = jax.random.normal(kx, (B, N, dim), dtype=jnp.float32)
    w_qkv = jax.random.normal(kq, (dim, inner * 3), dtype=jnp.float32) * (dim ** -0.5)
    w_out = jax.random.normal(ko, (inner, dim), dtype=jnp.float32) * (inner ** -0.5)
    b_out = jax.random.normal(kb, (dim,), dtype=jnp.float32) * 0.02

    out = attention_forward(x, w_qkv, w_out, b_out, heads=heads, dim_head=dim_head)
    jax.block_until_ready(out)

    ref = attention_reference(x, w_qkv, w_out, b_out, heads=heads, dim_head=dim_head)
    assert out.shape == (B, N, dim)
    # bf16 MXU inputs (f32 accumulation) -> tolerance loosened vs. pure-f32 path.
    max_diff = float(jnp.max(jnp.abs(out - ref)))
    assert jnp.allclose(out, ref, atol=5e-2, rtol=5e-2), (
        f"mismatch vs reference; max abs diff = {max_diff}")

    print("KERNEL_OK")
</pallas_src>

<mosaic_0001>
module attributes {stable_mosaic.version = 11 : i64} {
  func.func @_fused_attention_kernel(%arg0: i32, %arg1: i32, %arg2: memref<1x128x128xf32, #tpu.memory_space<vmem>>, %arg3: memref<128x128xf32, #tpu.memory_space<vmem>>, %arg4: memref<128x128xf32, #tpu.memory_space<vmem>>, %arg5: memref<128x128xf32, #tpu.memory_space<vmem>>, %arg6: memref<128x128xf32, #tpu.memory_space<vmem>>, %arg7: memref<1x128xf32, #tpu.memory_space<vmem>>, %arg8: memref<1x128x128xf32, #tpu.memory_space<vmem>>, %arg9: memref<128x128xf32, #tpu.memory_space<vmem>>) attributes {dimension_semantics = [#tpu.dimension_semantics<parallel>, #tpu.dimension_semantics<arbitrary>], iteration_bounds = array<i64: 2, 1>, scalar_prefetch = 0 : i64, scratch_operands = 1 : i64, tpu.core_type = #tpu.core_type<tc>, window_params = [{transform_indices = @transform_0, window_bounds = array<i64: 1, 128, 128>}, {transform_indices = @transform_1, window_bounds = array<i64: 128, 128>}, {transform_indices = @transform_2, window_bounds = array<i64: 128, 128>}, {transform_indices = @transform_3, window_bounds = array<i64: 128, 128>}, {transform_indices = @transform_4, window_bounds = array<i64: 128, 128>}, {pipeline_mode = #tpu.pipeline_mode<synchronous>, transform_indices = @transform_5, window_bounds = array<i64: 1, 128>}, {transform_indices = @transform_6, window_bounds = array<i64: 1, 128, 128>}]} {
    %c0_i32 = arith.constant 0 : i32
    %0 = arith.cmpi eq, %arg1, %c0_i32 : i32
    %1 = arith.extui %0 : i1 to i32
    %c0_i32_0 = arith.constant 0 : i32
    %2 = arith.cmpi ne, %1, %c0_i32_0 : i32
    scf.if %2 {
      %cst_35 = arith.constant 0.000000e+00 : f32
      %74 = vector.broadcast %cst_35 : f32 to vector<128x128xf32>
      %c0_36 = arith.constant 0 : index
      %c0_37 = arith.constant 0 : index
      %75 = vector.load %arg9[%c0_36, %c0_37] : memref<128x128xf32, #tpu.memory_space<vmem>>, vector<128x128xf32>
      tpu.vector_store %arg9[%c0_36, %c0_37], %74 {strides = array<i32>} : memref<128x128xf32, #tpu.memory_space<vmem>>, vector<128x128xf32>,
    } else {
    }
    %c0 = arith.constant 0 : index
    %c0_1 = arith.constant 0 : index
    %c0_2 = arith.constant 0 : index
    %3 = vector.load %arg2[%c0, %c0_1, %c0_2] : memref<1x128x128xf32, #tpu.memory_space<vmem>>, vector<1x128x128xf32>
    %4 = vector.shape_cast %3 : vector<1x128x128xf32> to vector<128x128xf32>
    %5 = arith.truncf %4 : vector<128x128xf32> to vector<128x128xbf16>
    %c0_3 = arith.constant 0 : index
    %c0_4 = arith.constant 0 : index
    %6 = vector.load %arg3[%c0_3, %c0_4] : memref<128x128xf32, #tpu.memory_space<vmem>>, vector<128x128xf32>
    %7 = arith.truncf %6 : vector<128x128xf32> to vector<128x128xbf16>
    %c0_5 = arith.constant 0 : index
    %c0_6 = arith.constant 0 : index
    %8 = vector.load %arg4[%c0_5, %c0_6] : memref<128x128xf32, #tpu.memory_space<vmem>>, vector<128x128xf32>
    %9 = arith.truncf %8 : vector<128x128xf32> to vector<128x128xbf16>
    %c0_7 = arith.constant 0 : index
    %c0_8 = arith.constant 0 : index
    %10 = vector.load %arg5[%c0_7, %c0_8] : memref<128x128xf32, #tpu.memory_space<vmem>>, vector<128x128xf32>
    %11 = arith.truncf %10 : vector<128x128xf32> to vector<128x128xbf16>
    %c0_9 = arith.constant 0 : index
    %c0_10 = arith.constant 0 : index
    %12 = vector.load %arg6[%c0_9, %c0_10] : memref<128x128xf32, #tpu.memory_space<vmem>>, vector<128x128xf32>
    %13 = arith.truncf %12 : vector<128x128xf32> to vector<128x128xbf16>
    %cst = arith.constant dense<0.000000e+00> : vector<128x128xf32>
    %14 = tpu.matmul %5, %7, %cst {dimension_numbers = #tpu.dot_dimension_numbers<[1], [0], [0], [1], [0, 0, 1, 1], [], []>} : vector<128x128xbf16>, vector<128x128xbf16>, vector<128x128xf32> -> vector<128x128xf32>
    %cst_11 = arith.constant dense<0.000000e+00> : vector<128x128xf32>
    %15 = tpu.matmul %5, %9, %cst_11 {dimension_numbers = #tpu.dot_dimension_numbers<[1], [0], [0], [1], [0, 0, 1, 1], [], []>} : vector<128x128xbf16>, vector<128x128xbf16>, vector<128x128xf32> -> vector<128x128xf32>
    %cst_12 = arith.constant dense<0.000000e+00> : vector<128x128xf32>
    %16 = tpu.matmul %5, %11, %cst_12 {dimension_numbers = #tpu.dot_dimension_numbers<[1], [0], [0], [1], [0, 0, 1, 1], [], []>} : vector<128x128xbf16>, vector<128x128xbf16>, vector<128x128xf32> -> vector<128x128xf32>
    %17 = vector.extract_strided_slice %14 {offsets = [0, 0], sizes = [128, 64], strides = [1, 1]} : vector<128x128xf32> to vector<128x64xf32>
    %18 = arith.truncf %17 : vector<128x64xf32> to vector<128x64xbf16>
    %19 = vector.extract_strided_slice %15 {offsets = [0, 0], sizes = [128, 64], strides = [1, 1]} : vector<128x128xf32> to vector<128x64xf32>
    %20 = arith.truncf %19 : vector<128x64xf32> to vector<128x64xbf16>
    %21 = vector.extract_strided_slice %16 {offsets = [0, 0], sizes = [128, 64], strides = [1, 1]} : vector<128x128xf32> to vector<128x64xf32>
    %22 = arith.truncf %21 : vector<128x64xf32> to vector<128x64xbf16>
    %cst_13 = arith.constant dense<0.000000e+00> : vector<128x128xf32>
    %23 = tpu.matmul %18, %20, %cst_13 {dimension_numbers = #tpu.dot_dimension_numbers<[1], [1], [0], [0], [0, 0, 1, 0], [], []>} : vector<128x64xbf16>, vector<128x64xbf16>, vector<128x128xf32> -> vector<128x128xf32>
    %cst_14 = arith.constant 0.0883883461 : f32
    %24 = vector.broadcast %cst_14 : f32 to vector<128x128xf32>
    %25 = arith.mulf %23, %24 : vector<128x128xf32>
    %cst_15 = arith.constant dense<0xFF800000> : vector<128xf32>
    %26 = vector.multi_reduction <maximumf>, %25, %cst_15 [1] : vector<128x128xf32> to vector<128xf32>
    %27 = vector.shape_cast %26 : vector<128xf32> to vector<128x1xf32>
    %28 = vector.broadcast %27 : vector<128x1xf32> to vector<128x128xf32>
    %29 = arith.subf %25, %28 : vector<128x128xf32>
    %30 = math.exp %29 : vector<128x128xf32>
    %cst_16 = arith.constant dense<0.000000e+00> : vector<128xf32>
    %31 = vector.multi_reduction <add>, %30, %cst_16 [1] : vector<128x128xf32> to vector<128xf32>
    %32 = vector.shape_cast %31 : vector<128xf32> to vector<128x1xf32>
    %33 = tpu.reciprocal %32 {approx = true} : vector<128x1xf32> -> vector<128x1xf32>
    %34 = vector.broadcast %33 : vector<128x1xf32> to vector<128x128xf32>
    %35 = arith.mulf %30, %34 : vector<128x128xf32>
    %36 = arith.truncf %35 : vector<128x128xf32> to vector<128x128xbf16>
    %cst_17 = arith.constant dense<0.000000e+00> : vector<128x64xf32>
    %37 = tpu.matmul %36, %22, %cst_17 {dimension_numbers = #tpu.dot_dimension_numbers<[1], [0], [0], [1], [0, 0, 1, 1], [], []>} : vector<128x128xbf16>, vector<128x64xbf16>, vector<128x64xf32> -> vector<128x64xf32>
    %c0_18 = arith.constant 0 : index
    %c0_19 = arith.constant 0 : index
    %38 = vector.load %arg9[%c0_18, %c0_19] : memref<128x128xf32, #tpu.memory_space<vmem>>, vector<128x128xf32>
    %39 = arith.truncf %37 : vector<128x64xf32> to vector<128x64xbf16>
    %40 = vector.extract_strided_slice %13 {offsets = [0, 0], sizes = [64, 128], strides = [1, 1]} : vector<128x128xbf16> to vector<64x128xbf16>
    %cst_20 = arith.constant dense<0.000000e+00> : vector<128x128xf32>
    %41 = tpu.matmul %39, %40, %cst_20 {dimension_numbers = #tpu.dot_dimension_numbers<[1], [0], [0], [1], [0, 0, 1, 1], [], []>} : vector<128x64xbf16>, vector<64x128xbf16>, vector<128x128xf32> -> vector<128x128xf32>
    %42 = arith.addf %38, %41 : vector<128x128xf32>
    %c0_21 = arith.constant 0 : index
    %c0_22 = arith.constant 0 : index
    %43 = vector.load %arg9[%c0_21, %c0_22] : memref<128x128xf32, #tpu.memory_space<vmem>>, vector<128x128xf32>
    tpu.vector_store %arg9[%c0_21, %c0_22], %42 {strides = array<i32>} : memref<128x128xf32, #tpu.memory_space<vmem>>, vector<128x128xf32>,
    %44 = vector.extract_strided_slice %14 {offsets = [0, 64], sizes = [128, 64], strides = [1, 1]} : vector<128x128xf32> to vector<128x64xf32>
    %45 = arith.truncf %44 : vector<128x64xf32> to vector<128x64xbf16>
    %46 = vector.extract_strided_slice %15 {offsets = [0, 64], sizes = [128, 64], strides = [1, 1]} : vector<128x128xf32> to vector<128x64xf32>
    %47 = arith.truncf %46 : vector<128x64xf32> to vector<128x64xbf16>
    %48 = vector.extract_strided_slice %16 {offsets = [0, 64], sizes = [128, 64], strides = [1, 1]} : vector<128x128xf32> to vector<128x64xf32>
    %49 = arith.truncf %48 : vector<128x64xf32> to vector<128x64xbf16>
    %cst_23 = arith.constant dense<0.000000e+00> : vector<128x128xf32>
    %50 = tpu.matmul %45, %47, %cst_23 {dimension_numbers = #tpu.dot_dimension_numbers<[1], [1], [0], [0], [0, 0, 1, 0], [], []>} : vector<128x64xbf16>, vector<128x64xbf16>, vector<128x128xf32> -> vector<128x128xf32>
    %cst_24 = arith.constant 0.0883883461 : f32
    %51 = vector.broadcast %cst_24 : f32 to vector<128x128xf32>
    %52 = arith.mulf %50, %51 : vector<128x128xf32>
    %cst_25 = arith.constant dense<0xFF800000> : vector<128xf32>
    %53 = vector.multi_reduction <maximumf>, %52, %cst_25 [1] : vector<128x128xf32> to vector<128xf32>
    %54 = vector.shape_cast %53 : vector<128xf32> to vector<128x1xf32>
    %55 = vector.broadcast %54 : vector<128x1xf32> to vector<128x128xf32>
    %56 = arith.subf %52, %55 : vector<128x128xf32>
    %57 = math.exp %56 : vector<128x128xf32>
    %cst_26 = arith.constant dense<0.000000e+00> : vector<128xf32>
    %58 = vector.multi_reduction <add>, %57, %cst_26 [1] : vector<128x128xf32> to vector<128xf32>
    %59 = vector.shape_cast %58 : vector<128xf32> to vector<128x1xf32>
    %60 = tpu.reciprocal %59 {approx = true} : vector<128x1xf32> -> vector<128x1xf32>
    %61 = vector.broadcast %60 : vector<128x1xf32> to vector<128x128xf32>
    %62 = arith.mulf %57, %61 : vector<128x128xf32>
    %63 = arith.truncf %62 : vector<128x128xf32> to vector<128x128xbf16>
    %cst_27 = arith.constant dense<0.000000e+00> : vector<128x64xf32>
    %64 = tpu.matmul %63, %49, %cst_27 {dimension_numbers = #tpu.dot_dimension_numbers<[1], [0], [0], [1], [0, 0, 1, 1], [], []>} : vector<128x128xbf16>, vector<128x64xbf16>, vector<128x64xf32> -> vector<128x64xf32>
    %c0_28 = arith.constant 0 : index
    %c0_29 = arith.constant 0 : index
    %65 = vector.load %arg9[%c0_28, %c0_29] : memref<128x128xf32, #tpu.memory_space<vmem>>, vector<128x128xf32>
    %66 = arith.truncf %64 : vector<128x64xf32> to vector<128x64xbf16>
    %67 = vector.extract_strided_slice %13 {offsets = [64, 0], sizes = [64, 128], strides = [1, 1]} : vector<128x128xbf16> to vector<64x128xbf16>
    %cst_30 = arith.constant dense<0.000000e+00> : vector<128x128xf32>
    %68 = tpu.matmul %66, %67, %cst_30 {dimension_numbers = #tpu.dot_dimension_numbers<[1], [0], [0], [1], [0, 0, 1, 1], [], []>} : vector<128x64xbf16>, vector<64x128xbf16>, vector<128x128xf32> -> vector<128x128xf32>
    %69 = arith.addf %65, %68 : vector<128x128xf32>
    %c0_31 = arith.constant 0 : index
    %c0_32 = arith.constant 0 : index
    %70 = vector.load %arg9[%c0_31, %c0_32] : memref<128x128xf32, #tpu.memory_space<vmem>>, vector<128x128xf32>
    tpu.vector_store %arg9[%c0_31, %c0_32], %69 {strides = array<i32>} : memref<128x128xf32, #tpu.memory_space<vmem>>, vector<128x128xf32>,
    %c0_i32_33 = arith.constant 0 : i32
    %71 = arith.cmpi eq, %arg1, %c0_i32_33 : i32
    %72 = arith.extui %71 : i1 to i32
    %c0_i32_34 = arith.constant 0 : i32
    %73 = arith.cmpi ne, %72, %c0_i32_34 : i32
    scf.if %73 {
      %c0_35 = arith.constant 0 : index
      %c0_36 = arith.constant 0 : index
      %74 = vector.load %arg9[%c0_35, %c0_36] : memref<128x128xf32, #tpu.memory_space<vmem>>, vector<128x128xf32>
      %c0_37 = arith.constant 0 : index
      %c0_38 = arith.constant 0 : index
      %75 = vector.load %arg7[%c0_37, %c0_38] : memref<1x128xf32, #tpu.memory_space<vmem>>, vector<1x128xf32>
      %76 = vector.broadcast %75 : vector<1x128xf32> to vector<128x128xf32>
      %77 = arith.addf %74, %76 : vector<128x128xf32>
      %c0_39 = arith.constant 0 : index
      %c0_40 = arith.constant 0 : index
      %c0_41 = arith.constant 0 : index
      %78 = vector.load %arg8[%c0_39, %c0_40, %c0_41] : memref<1x128x128xf32, #tpu.memory_space<vmem>>, vector<1x128x128xf32>
      %79 = vector.shape_cast %78 : vector<1x128x128xf32> to vector<128x128xf32>
      %80 = vector.shape_cast %77 : vector<128x128xf32> to vector<1x128x128xf32>
      tpu.vector_store %arg8[%c0_39, %c0_40, %c0_41], %80 {strides = array<i32>} : memref<1x128x128xf32, #tpu.memory_space<vmem>>, vector<1x128x128xf32>,
    } else {
    }
    return
  }
  func.func @transform_0(%arg0: i32, %arg1: i32) -> (i32, i32, i32) {
    %c0_i32 = arith.constant 0 : i32
    %c0_i32_0 = arith.constant 0 : i32
    %c0_i32_1 = arith.constant 0 : i32
    return %arg0, %c0_i32, %c0_i32_0 : i32, i32, i32
  }
  func.func @transform_1(%arg0: i32, %arg1: i32) -> (i32, i32) {
    %c0_i32 = arith.constant 0 : i32
    %c0_i32_0 = arith.constant 0 : i32
    return %c0_i32, %arg1 : i32, i32
  }
  func.func @transform_2(%arg0: i32, %arg1: i32) -> (i32, i32) {
    %c1_i32 = arith.constant 1 : i32
    %0 = arith.addi %c1_i32, %arg1 : i32
    %c0_i32 = arith.constant 0 : i32
    %c0_i32_0 = arith.constant 0 : i32
    return %c0_i32, %0 : i32, i32
  }
  func.func @transform_3(%arg0: i32, %arg1: i32) -> (i32, i32) {
    %c2_i32 = arith.constant 2 : i32
    %0 = arith.addi %c2_i32, %arg1 : i32
    %c0_i32 = arith.constant 0 : i32
    %c0_i32_0 = arith.constant 0 : i32
    return %c0_i32, %0 : i32, i32
  }
  func.func @transform_4(%arg0: i32, %arg1: i32) -> (i32, i32) {
    %c0_i32 = arith.constant 0 : i32
    %c0_i32_0 = arith.constant 0 : i32
    return %arg1, %c0_i32 : i32, i32
  }
  func.func @transform_5(%arg0: i32, %arg1: i32) -> (i32, i32) {
    %c0_i32 = arith.constant 0 : i32
    %c0_i32_0 = arith.constant 0 : i32
    %c0_i32_1 = arith.constant 0 : i32
    return %c0_i32, %c0_i32_0 : i32, i32
  }
  func.func @transform_6(%arg0: i32, %arg1: i32) -> (i32, i32, i32) {
    %c0_i32 = arith.constant 0 : i32
    %c0_i32_0 = arith.constant 0 : i32
    %c0_i32_1 = arith.constant 0 : i32
    return %arg0, %c0_i32, %c0_i32_0 : i32, i32, i32
  }
}

</mosaic_0001>

<bundles_post_ra>
// kernel: tpu_custom_call.1
= control target key start
LH: loop header
LB: loop body
LE: loop exit
PB: predicated region body
PF: predicated region fallthrough
CT: control target
= control target key end

     0   :  { %s4213_s0 = inlined_call_operand.hbm [shape: f32[2,128,128], index: 0, kind: input, shape index: {}]   ;;  %s4214_s1 = inlined_call_operand.hbm [shape: f32[128,384], index: 1, kind: input, shape index: {}]   ;;  %s4215_s2 = inlined_call_operand.hbm [shape: f32[128,384], index: 2, kind: input, shape index: {}]   ;;  %s4216_s3 = inlined_call_operand.hbm [shape: f32[128,384], index: 3, kind: input, shape index: {}]   ;;  %s4217_s4 = inlined_call_operand.hbm [shape: f32[128,128], index: 4, kind: input, shape index: {}]   ;;  %s4218_s5 = inlined_call_operand.vmem [shape: f32[1,128], index: 5, kind: input, shape index: {}]   ;;  %s4219_s6 = inlined_call_operand.hbm [shape: f32[2,128,128], index: 6, kind: output, shape index: {}]  }
   0x1   :  { %4231 = sst [smem:[#allocation21_spill]] %s4214_s1 }
   0x2   :  { %4232 = sst [smem:[#allocation22_spill]] %s4218_s5 }
   0x3   :  { %4233 = sst [smem:[#allocation23_spill]] %s4219_s6 }
   0x4   :  { %11 = vsyncpa [#allocation4], 0 }
   0x5   :  { %13 = vsyncpa [#allocation4 + $0x1], 0 }
   0x6   :  { %14 = vsyncpa [#allocation7], 0 }
   0x7   :  { %15 = vsyncpa [#allocation10], 0 }
   0x8   :  { %16 = vsyncpa [#allocation5], 0 }
   0x9   :  { %18 = vsyncpa [#allocation5 + $0x1], 0  ;;  %s3328_s21 = smov 0   ;;  %s3330_s22 = smov 0  }
   0xa   :  { %s3332_s23 = smov 0   ;;  %s3334_s24 = smov 0  }
   0xb   :  { %s3336_s25 = smov 0   ;;  %s3338_s26 = smov 0  }
   0xc LB: > { %4234 = sst [smem:[#allocation17_spill]] %s3259_s21  ;;  %s2290_s27 = sadd.s32 4294967295, %s3279_s26   ;;  %s3279_s26 = sphi %s3338_s26, %s24_s26   ;;  %s3275_s25 = sphi %s3336_s25, %s4267_s25   ;;  %s3271_s24 = sphi %s3334_s24, %s4266_s24   ;;  %s3267_s23 = sphi %s3332_s23, %s4265_s23   ;;  %s3263_s22 = sphi %s3330_s22, %s4264_s22   ;;  %s3259_s21 = sphi %s3328_s21, %s4263_s21  }
   0xd   : > { %4235 = sst [smem:[#allocation18_spill]] %s3271_s24  ;;  %s2291_s28 = sadd.s32 4294967294, %s3279_s26  }
   0xe   : > { %p56_p0 = scmp.ne.s32.totalorder %s3263_s22, %s3259_s21  ;;  %p3362_p1 = scmp.eq.s32.totalorder %s2290_s27, 0 }
   0xf   : > { %p3366_p2 = scmp.eq.s32.totalorder %s2290_s27, 1  ;;  %p215_p3 = scmp.eq.s32.totalorder %s2291_s28, 1 }
  0x10   : > { %s4236_s29 = scalar_select %p3362_p1, 1, 0 }
  0x11   : > { %s4238_s30 = scalar_select %p3366_p2, 1, 0 }
  0x12   : > { %4237 = sst [smem:[#allocation19_spill]] %s4236_s29  ;;  %p3372_p4 = por %p3362_p1, %p56_p0 }
  0x13   : > { %p2292_p5 = scmp.ge.s32.totalorder %s3279_s26, 1  ;;  %p3377_p6 = por %p215_p3, %p56_p0 }
  0x14   : > { %s4239_s7 = scalar_select %p3372_p4, 1, 0 }
  0x15   : > { %s4240_s8 = scalar_select %p3377_p6, 1, 0 }
  0x16   : > { %p222_p7 = scmp.lt.s32.totalorder %s3279_s26, 3  ;;  %s3281_s10 = smov [#allocation6]  }
  0x17   : > { %4241 = sst [smem:[#allocation20_spill]] %s4240_s8  ;;  %s236_s11 = sshll.u32 %s3281_s10, 4  ;;  %s3386_s11 = int_to_ptr.vmem [resolvable:$true] %s236_s11 }
  0x18   : > { %p3382_p8 = pnand %p2292_p5, %p222_p7  ;;  %s3400_s15 = scalar_lea.hbm %s4216_s3, 256 }
  0x19   : > { %s3405_s18 = scalar_lea.hbm %s4215_s2, 128  ;;  %s3282_s19 = smov [#allocation9]  }
  0x1a   : > { %s4242_s9 = scalar_select %p3382_p8, 1, 0 }
  0x1b   : > { %p2824_p9 = pneg %p3382_p8  ;;  %s268_s20 = sshll.u32 %s3282_s19, 4  ;;  %s269_s20 = int_to_ptr.vmem [resolvable:$true] %s268_s20 }
  0x1c   : > { %s4244_s1 = sld [smem:[#allocation21_spill]] }
  0x1d   : > { %p3393_p11 = pnand %p2824_p9, %p3362_p1 }
  0x1f   : > { %s4243_s12 = scalar_select %p3393_p11, 1, 0 }
  0x20   : > { %p3415_p13 = pneg %p3393_p11 }
  0x22   : > { %s3041_s10 = scalar_lea.hbm %s4244_s1, 2048  ;;  %s3046_s17 = scalar_lea.hbm %s4244_s1, 6144 }
  0x23   : > { %p3042_p12 = scmp.ne.s32.totalorder %s4244_s1, %s3041_s10  ;;  %p3047_p5 = scmp.lt.u32.totalorder %s3046_s17, %s3041_s10 }
  0x24   : > { %p3048_p7 = scmp.lt.u32.totalorder %s3041_s10, %s4244_s1 }
  0x25   : > { %p3044_p0 = pnand %p3415_p13, %p3042_p12 }
  0x26   : > { %p3049_p9 = por %p3048_p7, %p3047_p5 }
  0x27   : > { %p3045_p3 = pneg %p3044_p0 }
  0x29   : > { %p3050_p10 = pnand %p3049_p9, %p3045_p3 }
  0x2b   : > { %3053 = shalt.err (!%p3050_p10)
}
  0x2c   : > { %s3054_s21 = scalar_lea.vmem %s3386_s11, 2048  ;;  %p3062_p1 = scmp.lt.s32.totalorder %s3386_s11, %s3386_s11 }
  0x2d   : > { %p3055_p6 = scmp.ne.s32.totalorder %s3386_s11, %s3054_s21  ;;  %p3063_p4 = scmp.lt.s32.totalorder %s3054_s21, %s3054_s21 }
  0x2f   : > { %p3057_p12 = pnand %p3055_p6, %p3415_p13  ;;  %p3064_p8 = por %p3063_p4, %p3062_p1 }
  0x31   : > { %p3058_p0 = pneg %p3057_p12 }
  0x33   : > { %p3065_p2 = pnand %p3064_p8, %p3058_p0 }
  0x35   : > { %3068 = shalt.err (!%p3065_p2)
}
  0x36   : > { %s3283_s8 = smov 384   ;;  %s3284_s28 = smov 128  }
  0x37   : > { %s3285_s10 = smov 8   ;;  %s3099_s27 = scalar_lea.hbm %s4216_s3, 2304 }
  0x38   : > { %2827 = dma.hbm_to_vmem [thread:$0]  (!%p3393_p11), %s4244_s1, 2048, %s3386_s11, [#allocation7], %s3283_s8, %s3284_s28, %s3285_s10  }
  0x39   : > { %p3070_p1 = scmp.ne.s32.totalorder %s3400_s15, %s3099_s27  ;;  %s3074_s24 = scalar_lea.hbm %s4216_s3, 6144 }
  0x3a   : > { %p3075_p6 = scmp.lt.u32.totalorder %s3400_s15, %s4216_s3  ;;  %p3076_p8 = scmp.lt.u32.totalorder %s3074_s24, %s3099_s27 }
  0x3b   : > { %p3072_p2 = pnand %p3070_p1, %p3415_p13  ;;  %p3078_p3 = scmp.lt.u32.totalorder %s3099_s27, %s3400_s15 }
  0x3c   : > { %p3077_p10 = por %p3076_p8, %p3075_p6 }
  0x3d   : > { %p3073_p4 = pneg %p3072_p2 }
  0x3e   : > { %p3079_p5 = por %p3078_p3, %p3077_p10 }
  0x40   : > { %p3080_p7 = pnand %p3079_p5, %p3073_p4 }
  0x42   : > { %3083 = shalt.err (!%p3080_p7)
}
  0x43   : > { %s3084_s11 = scalar_lea.vmem %s269_s20, 2048  ;;  %p3092_p1 = scmp.lt.s32.totalorder %s269_s20, %s269_s20 }
  0x44   : > { %p3085_p9 = scmp.ne.s32.totalorder %s269_s20, %s3084_s11  ;;  %p3093_p2 = scmp.lt.s32.totalorder %s3084_s11, %s3084_s11 }
  0x46   : > { %p3087_p12 = pnand %p3085_p9, %p3415_p13  ;;  %p3094_p11 = por %p3093_p2, %p3092_p1 }
  0x48   : > { %p3088_p0 = pneg %p3087_p12 }
  0x4a   : > { %p3095_p6 = pnand %p3094_p11, %p3088_p0 }
  0x4c   : > { %3098 = shalt.err (!%p3095_p6)
}
  0x4d   : > { %p4246_p8 = scmp.ne.s32.totalorder %s4243_s12, 0  ;;  %s3286_s5 = smov [#allocation8]  }
  0x4e   : > { %s252_s6 = sshll.u32 %s3286_s5, 4  ;;  %s3287_s24 = smov [#allocation11]   ;;  %s253_s6 = int_to_ptr.vmem [resolvable:$true] %s252_s6 }
  0x4f   : > { %2833 = dma.hbm_to_vmem [thread:$0]  (!%p4246_p8), %s3400_s15, 2048, %s269_s20, [#allocation10], %s3283_s8, %s3284_s28, %s3285_s10  }
  0x50   : > { %s284_s29 = sshll.u32 %s3287_s24, 4  ;;  %s3130_s17 = scalar_lea.hbm %s4215_s2, 2176  ;;  %s285_s29 = int_to_ptr.vmem [resolvable:$true] %s284_s29 }
  0x51   : > { %p3101_p11 = scmp.ne.s32.totalorder %s3405_s18, %s3130_s17  ;;  %s3105_s21 = scalar_lea.hbm %s4215_s2, 6144 }
  0x52   : > { %p3106_p3 = scmp.lt.u32.totalorder %s3405_s18, %s4215_s2  ;;  %p3107_p5 = scmp.lt.u32.totalorder %s3105_s21, %s3130_s17 }
  0x53   : > { %p3103_p4 = pnand %p3101_p11, %p3415_p13  ;;  %p3109_p9 = scmp.lt.u32.totalorder %s3130_s17, %s3405_s18 }
  0x54   : > { %p3108_p7 = por %p3107_p5, %p3106_p3 }
  0x55   : > { %p3104_p10 = pneg %p3103_p4 }
  0x56   : > { %p3110_p12 = por %p3109_p9, %p3108_p7 }
  0x58   : > { %p3111_p0 = pnand %p3110_p12, %p3104_p10 }
  0x5a   : > { %3114 = shalt.err (!%p3111_p0)
}
  0x5b   : > { %s3115_s15 = scalar_lea.vmem %s253_s6, 2048  ;;  %p3123_p11 = scmp.lt.s32.totalorder %s253_s6, %s253_s6 }
  0x5c   : > { %p3116_p1 = scmp.ne.s32.totalorder %s253_s6, %s3115_s15  ;;  %p3124_p4 = scmp.lt.s32.totalorder %s3115_s15, %s3115_s15 }
  0x5e   : > { %p3118_p2 = pnand %p3116_p1, %p3415_p13  ;;  %p3125_p8 = por %p3124_p4, %p3123_p11 }
  0x60   : > { %p3119_p6 = pneg %p3118_p2 }
  0x62   : > { %p3126_p3 = pnand %p3125_p8, %p3119_p6 }
  0x64   : > { %3129 = shalt.err (!%p3126_p3)
}
  0x65   : > { %p4247_p5 = scmp.ne.s32.totalorder %s4243_s12, 0  ;;  %s3131_s5 = scalar_lea.hbm %s4217_s4, 2048 }
  0x66   : > { %p3132_p10 = scmp.ne.s32.totalorder %s4217_s4, %s3131_s5  ;;  %p3138_p9 = scmp.lt.u32.totalorder %s3131_s5, %s4217_s4 }
  0x67   : > { %2830 = dma.hbm_to_vmem [thread:$0]  (!%p4247_p5), %s3405_s18, 2048, %s253_s6, [#allocation7], %s3283_s8, %s3284_s28, %s3285_s10  }
  0x68   : > { %p3134_p8 = pnand %p3132_p10, %p3415_p13 }
  0x6a   : > { %p3135_p7 = pneg %p3134_p8 }
  0x6c   : > { %p3140_p12 = pnand %p3138_p9, %p3135_p7 }
  0x6e   : > { %3143 = shalt.err (!%p3140_p12)
}
  0x6f   : > { %s3144_s19 = scalar_lea.vmem %s285_s29, 2048  ;;  %p3152_p6 = scmp.lt.s32.totalorder %s285_s29, %s285_s29 }
  0x70   : > { %p3145_p0 = scmp.ne.s32.totalorder %s285_s29, %s3144_s19  ;;  %p3153_p11 = scmp.lt.s32.totalorder %s3144_s19, %s3144_s19 }
  0x72   : > { %p3147_p1 = pnand %p3145_p0, %p3415_p13  ;;  %p3154_p4 = por %p3153_p11, %p3152_p6 }
  0x74   : > { %p3148_p2 = pneg %p3147_p1 }
  0x76   : > { %p3155_p3 = pnand %p3154_p4, %p3148_p2 }
  0x78   : > { %3158 = shalt.err (!%p3155_p3)
}
  0x79   : > { %2836 = dma.hbm_to_vmem [thread:$0]  (!%p4247_p5), %s4217_s4, 2048, %s285_s29, [#allocation10], %s3284_s28, %s3284_s28, %s3285_s10  }
  0x7a   : > { %s43_s13 = sadd.s32 1, %s3267_s23  ;;  %s36_s12 = sadd.s32 1, %s3275_s25 }
  0x7b   : > { %p50_p13 = scmp.ne.s32.totalorder %s3267_s23, %s3263_s22  ;;  %p38_p10 = scmp.ge.s32.totalorder %s36_s12, 2 }
  0x7c   : > { %p51_p8 = scmp.eq.s32.totalorder %s3279_s26, 0  ;;  %p4248_p7 = scmp.ne.s32.totalorder %s4238_s30, 0 }
  0x7d   : > { %p2849_p12 = scmp.lt.s32.totalorder %s3279_s26, 2  ;;  %s4269_s12 = smov (%p38_p10, %s36_s12), 0 }
  0x7e   : > { %p3514_p9 = por %p4248_p7, %p50_p13  ;;  %p52_p0 = por %p51_p8, %p50_p13 }
  0x7f   : > { %s301_s27 = sand.u32 1, %s3267_s23   ;;  %s40_s21 = ssub.s32 %s3275_s25, %s4269_s12 }
  0x80   : > { %p41_p1 = scmp.eq.s32.totalorder %s40_s21, 0  ;;  %s2298_s29 = sshll.u32 %s301_s27, 7 }
  0x81   : > { %s2346_s11 = sshll.u32 %s3275_s25, 11  ;;  %s305_s5 = scalar_lea.vmem [#allocation3], %s2298_s29 }
  0x82   : > { %s3526_s15 = scalar_select %p41_p1, %s3267_s23, %s43_s13  }
  0x83   : > { %s3531_s30 = scalar_lea.hbm %s4213_s0, %s2346_s11  ;;  %s312_s24 = sshll.u32 %s305_s5, 4  ;;  %s3533_s24 = int_to_ptr.vmem [resolvable:$true] %s312_s24 }
  0x84   : > { %p3537_p5 = pnand %p2849_p12, %p52_p0  ;;  %s3541_s16 = scalar_lea.sflag [#allocation4], %s301_s27 }
  0x85   : > { %s3159_s17 = scalar_lea.hbm %s3531_s30, 2048  ;;  %s3164_s8 = scalar_lea.hbm %s4213_s0, 4096 }
  0x86   : > { %p3160_p2 = scmp.ne.s32.totalorder %s3531_s30, %s3159_s17  ;;  %p3161_p6 = pneg %p3537_p5 }
  0x87   : > { %p3165_p3 = scmp.lt.u32.totalorder %s3531_s30, %s4213_s0  ;;  %p3166_p13 = scmp.lt.u32.totalorder %s3164_s8, %s3159_s17 }
  0x88   : > { %p3162_p11 = pnand %p3161_p6, %p3160_p2  ;;  %p3168_p8 = scmp.lt.u32.totalorder %s3159_s17, %s3531_s30 }
  0x89   : > { %p3167_p10 = por %p3166_p13, %p3165_p3 }
  0x8a   : > { %p3163_p4 = pneg %p3162_p11 }
  0x8b   : > { %p3169_p7 = por %p3168_p8, %p3167_p10 }
  0x8d   : > { %p3170_p12 = pnand %p3169_p7, %p3163_p4 }
  0x8f   : > { %3173 = shalt.err (!%p3170_p12)
}
  0x90   : > { %s3174_s27 = scalar_lea.vmem %s3533_s24, 2048  ;;  %s3288_s29 = smov [#allocation3]  }
  0x91   : > { %p3175_p0 = scmp.ne.s32.totalorder %s3533_s24, %s3174_s27  ;;  %s3179_s11 = sshll.u32 %s3288_s29, 4  ;;  %s3180_s11 = int_to_ptr.vmem [resolvable:$false] %s3179_s11 }
  0x92   : > { %s3181_s1 = scalar_lea.vmem %s3180_s11, 4096  ;;  %p3182_p11 = scmp.lt.s32.totalorder %s3533_s24, %s3180_s11 }
  0x93   : > { %p3177_p1 = pnand %p3175_p0, %p3161_p6  ;;  %p3183_p3 = scmp.lt.s32.totalorder %s3181_s1, %s3174_s27 }
  0x95   : > { %p3178_p2 = pneg %p3177_p1  ;;  %p3184_p13 = por %p3183_p3, %p3182_p11 }
  0x97   : > { %p3185_p10 = pnand %p3184_p13, %p3178_p2 }
  0x99   : > { %3188 = shalt.err (!%p3185_p10)
}
  0x9a   : > { %2840 = dma.hbm_to_vmem [thread:$0]  (!%p3537_p5), %s3531_s30, 2048, %s3533_s24, %s3541_s16, %s3284_s28, %s3284_s28, %s3285_s10  }
  0x9b   : > { %p4251_p6 = scmp.ne.s32.totalorder %s4242_s9, 0 }
  0x9c   : > { %s3575_s20 = sand.u32 (!%p4251_p6), 1, %s3263_s22   ;;  %p4252_p4 = scmp.ne.s32.totalorder (!%p4251_p6), %s4239_s7, 0 }
  0x9d   : > { %324 = sbr.rel (%p4251_p6) target bundleno = 1755 (0x6db), region = 44  ;;  %s2302_s5 = sshll.u32 (!%p4251_p6), %s3575_s20, 7 }
  0x9e   : > { %s327_s17 = scalar_lea.sflag (!%p4251_p6), [#allocation4], %s3575_s20  ;;  %s3581_s14 = scalar_lea.vmem (!%p4251_p6), [#allocation3], %s2302_s5 }
  0xa4   : > { %3242 = dma.done.wait (%p4252_p4), %s327_s17, 2048  }
  0xa5   : > { %3244 = vsyncadd (%p4252_p4), %s327_s17, 4294965248  ;;  %s4253_s28 = sld [smem:[#allocation19_spill]] }
  0xab   : > { %p4254_p5 = scmp.ne.s32.totalorder %s4253_s28, 0 }
  0xad   : > { %3246 = dma.done.wait (%p4254_p5), [#allocation7], 4096  }
  0xae   : > { %3248 = vsyncadd (%p4254_p5), [#allocation7], 4294963200 }
  0xaf   : > { %3250 = dma.done.wait (%p4254_p5), [#allocation10], 4096  }
  0xb0   : > { %3252 = vsyncadd (%p4254_p5), [#allocation10], 4294963200  ;;  %v447_v0 = vld [vmem:[#allocation8] sm:$0xff]  ;;  %v448_v1 = vld [vmem:[#allocation8 + $0x8] sm:$0xff]  ;;  %vm834_vm0 = vcmask 523264   ;;  %s3289_s7 = smov 64  }
  0xb1   : > { %v449_v2 = vld [vmem:[#allocation8 + $0x10] sm:$0xff]  ;;  %v463_v3 = vpack.c.bf16 %v448_v1, %v447_v0  ;;  %v450_v4 = vld [vmem:[#allocation8 + $0x18] sm:$0xff]  ;;  %v451_v6 = vld [vmem:[#allocation8 + $0x20] sm:$0xff]  ;;  %s4255_s30 = sld [smem:[#allocation22_spill]]  ;;  %s4139_s24 = scalar_lea.vmem [#allocation12], %s2302_s5 }
  0xb2   : > { %v464_v5 = vpack.c.bf16 %v450_v4, %v449_v2  ;;  %v452_v7 = vld [vmem:[#allocation8 + $0x28] sm:$0xff]  ;;  %v399_v9 = vld [vmem:[%s3581_s14] sm:$0xff]  ;;  %v453_v11 = vld [vmem:[#allocation8 + $0x30] sm:$0xff]  ;;  %s4256_s16 = sld [smem:[#allocation18_spill]]  ;;  %s2161_s18 = sshll.u32 %s4139_s24, 4  ;;  %s4161_s18 = int_to_ptr.vmem [resolvable:$true] %s2161_s18 }
  0xb3   : > { %2516 = vmatprep.subr.bf16.mxu1 %v463_v3  ;;  %v465_v8 = vpack.c.bf16 %v452_v7, %v451_v6  ;;  %v400_v10 = vld [vmem:[%s3581_s14 + $0x8] sm:$0xff]  ;;  %v454_v12 = vld [vmem:[#allocation8 + $0x38] sm:$0xff]  ;;  %v423_v14 = vld [vmem:[#allocation6] sm:$0xff]  ;;  %s4257_s21 = sld [smem:[#allocation23_spill]]  ;;  %s2148_s11 = scalar_lea.sflag [#allocation5], %s3575_s20 }
  0xb4   : > { %2517 = vmatpush3.bf16.msra.mxu1 %v463_v3  ;;  %v3597_v13 = vpack.c.bf16 %v400_v10, %v399_v9  ;;  %v424_v15 = vld [vmem:[#allocation6 + $0x8] sm:$0xff]  ;;  %v425_v17 = vld [vmem:[#allocation6 + $0x10] sm:$0xff]  ;;  %v466_v18 = vpack.c.bf16 %v454_v12, %v453_v11  ;;  %v426_v19 = vld [vmem:[#allocation6 + $0x18] sm:$0xff]  ;;  %s3189_s1 = scalar_lea.vmem %s4161_s18, 2048  ;;  %s3290_s5 = smov [#allocation12]  }
  0xb5   : > { %2518 = vmatprep.subr.bf16.mxu1 %v464_v5  ;;  %v439_v16 = vpack.c.bf16 %v424_v15, %v423_v14  ;;  %v427_v20 = vld [vmem:[#allocation6 + $0x20] sm:$0xff]  ;;  %v428_v21 = vld [vmem:[#allocation6 + $0x28] sm:$0xff]  ;;  %v440_v24 = vpack.c.bf16 %v426_v19, %v425_v17  ;;  %v429_v27 = vld [vmem:[#allocation6 + $0x30] sm:$0xff]  ;;  %p3190_p8 = scmp.ne.s32.totalorder %s4161_s18, %s3189_s1  ;;  %s3193_s17 = sshll.u32 %s3290_s5, 4  ;;  %s3194_s17 = int_to_ptr.vmem [resolvable:$false] %s3193_s17 }
  0xb6   : > { %2532 = vmatprep.mubr.bf16.mxu1 %v3597_v13  ;;  %2500 = vmatprep.mubr.bf16.mxu0 %v3597_v13  ;;  %v455_v22 = vld [vmem:[#allocation8 + $0x40] sm:$0xff]  ;;  %v456_v23 = vld [vmem:[#allocation8 + $0x48] sm:$0xff]  ;;  %v441_v25 = vpack.c.bf16 %v428_v21, %v427_v20  ;;  %v430_v28 = vld [vmem:[#allocation6 + $0x38] sm:$0xff]  ;;  %p3196_p0 = scmp.lt.s32.totalorder %s4161_s18, %s3194_s17 }
  0xb7   : > { %2484 = vmatprep.subr.bf16.mxu0 %v439_v16  ;;  %v467_v26 = vpack.c.bf16 %v456_v23, %v455_v22  ;;  %v457_v29 = vld [vmem:[#allocation8 + $0x50] sm:$0xff]  ;;  %v458_v30 = vld [vmem:[#allocation8 + $0x58] sm:$0xff]  ;;  %v442_v31 = vpack.c.bf16 %v430_v28, %v429_v27  ;;  %v431_v33 = vld [vmem:[#allocation6 + $0x40] sm:$0xff]  ;;  %p3191_p7 = pnand %p3190_p8, %p3514_p9 }
  0xb8   : > { %2519 = vmatpush3.bf16.msra.mxu1 %v464_v5  ;;  %2485 = vmatpush3.bf16.msra.mxu0 %v439_v16  ;;  %v468_v32 = vpack.c.bf16 %v458_v30, %v457_v29  ;;  %v432_v34 = vld [vmem:[#allocation6 + $0x48] sm:$0xff]  ;;  %v459_v35 = vld [vmem:[#allocation8 + $0x60] sm:$0xff]  ;;  %v433_v39 = vld [vmem:[#allocation6 + $0x50] sm:$0xff]  ;;  %s2347_s19 = sshll.u32 %s4256_s16, 11 }
  0xb9   : > { %2520 = vmatprep.subr.bf16.mxu1 %v465_v8  ;;  %2486 = vmatprep.subr.bf16.mxu0 %v440_v24  ;;  %v460_v36 = vld [vmem:[#allocation8 + $0x68] sm:$0xff]  ;;  %v443_v37 = vpack.c.bf16 %v432_v34, %v431_v33  ;;  %v434_v40 = vld [vmem:[#allocation6 + $0x58] sm:$0xff]  ;;  %v461_v41 = vld [vmem:[#allocation8 + $0x70] sm:$0xff]  ;;  %s4258_s27 = smov %s4257_s21  ;;  %s4159_s29 = scalar_lea.hbm %s4257_s21, %s2347_s19 }
  0xba   : > { %v469_v38 = vpack.c.bf16 %v460_v36, %v459_v35  ;;  %v462_v42 = vld [vmem:[#allocation8 + $0x78] sm:$0xff]  ;;  %v444_v43 = vpack.c.bf16 %v434_v40, %v433_v39  ;;  %v435_v45 = vld [vmem:[#allocation6 + $0x60] sm:$0xff]  ;;  %v436_v46 = vld [vmem:[#allocation6 + $0x68] sm:$0xff]  ;;  %p3192_p12 = pneg %p3191_p7 }
  0xbb   : > { %v470_v44 = vpack.c.bf16 %v462_v42, %v461_v41  ;;  %v401_v47 = vld [vmem:[%s3581_s14 + $0x10] sm:$0xff]  ;;  %v402_v48 = vld [vmem:[%s3581_s14 + $0x18] sm:$0xff]  ;;  %v403_v49 = vld [vmem:[%s3581_s14 + $0x20] sm:$0xff]  ;;  %v445_v50 = vpack.c.bf16 %v436_v46, %v435_v45 }
  0xbc   : > { %2521 = vmatpush3.bf16.msra.mxu1 %v465_v8  ;;  %2487 = vmatpush3.bf16.msra.mxu0 %v440_v24  ;;  %v404_v51 = vld [vmem:[%s3581_s14 + $0x28] sm:$0xff]  ;;  %v437_v52 = vld [vmem:[#allocation6 + $0x70] sm:$0xff]  ;;  %v438_v53 = vld [vmem:[#allocation6 + $0x78] sm:$0xff]  ;;  %v3605_v54 = vpack.c.bf16 %v402_v48, %v401_v47 }
  0xbd   : > { %2522 = vmatprep.subr.bf16.mxu1 %v466_v18  ;;  %2488 = vmatprep.subr.bf16.mxu0 %v441_v25  ;;  %v3607_v55 = vpack.c.bf16 %v404_v51, %v403_v49  ;;  %v446_v56 = vpack.c.bf16 %v438_v53, %v437_v52  ;;  %v405_v57 = vld [vmem:[%s3581_s14 + $0x30] sm:$0xff]  ;;  %v406_v58 = vld [vmem:[%s3581_s14 + $0x38] sm:$0xff]  ;;  %v407_v59 = vld [vmem:[%s3581_s14 + $0x40] sm:$0xff] }
  0xbe   : > { %v408_v60 = vld [vmem:[%s3581_s14 + $0x48] sm:$0xff]  ;;  %v3615_v61 = vpack.c.bf16 %v406_v58, %v405_v57  ;;  %v409_v63 = vld [vmem:[%s3581_s14 + $0x50] sm:$0xff]  ;;  %v410_v0 = vld [vmem:[%s3581_s14 + $0x58] sm:$0xff] }
  0xbf   : > { %v3617_v62 = vpack.c.bf16 %v408_v60, %v407_v59  ;;  %v411_v1 = vld [vmem:[%s3581_s14 + $0x60] sm:$0xff]  ;;  %v412_v2 = vld [vmem:[%s3581_s14 + $0x68] sm:$0xff]  ;;  %v3627_v3 = vpack.c.bf16 %v410_v0, %v409_v63  ;;  %v413_v5 = vld [vmem:[%s3581_s14 + $0x70] sm:$0xff] }
  0xc0   : > { %2523 = vmatpush3.bf16.msra.mxu1 %v466_v18  ;;  %2489 = vmatpush3.bf16.msra.mxu0 %v441_v25  ;;  %v3629_v4 = vpack.c.bf16 %v412_v2, %v411_v1  ;;  %v414_v6 = vld [vmem:[%s3581_s14 + $0x78] sm:$0xff]  ;;  %s3195_s14 = scalar_lea.vmem %s3194_s17, 4096 }
  0xc1   : > { %2524 = vmatprep.subr.bf16.mxu1 %v467_v26  ;;  %2490 = vmatprep.subr.bf16.mxu0 %v442_v31  ;;  %v3637_v7 = vpack.c.bf16 %v414_v6, %v413_v5  ;;  %p3197_p1 = scmp.lt.s32.totalorder %s3195_s14, %s3189_s1 }
  0xc3   : > { %p3198_p2 = por %p3197_p1, %p3196_p0 }
  0xc4   : > { %2525 = vmatpush3.bf16.msra.mxu1 %v467_v26  ;;  %2491 = vmatpush3.bf16.msra.mxu0 %v442_v31 }
  0xc5   : > { %2526 = vmatprep.subr.bf16.mxu1 %v468_v32  ;;  %2492 = vmatprep.subr.bf16.mxu0 %v443_v37  ;;  %p3199_p11 = pnand %p3198_p2, %p3192_p12 }
  0xc8   : > { %2527 = vmatpush3.bf16.msra.mxu1 %v468_v32  ;;  %2493 = vmatpush3.bf16.msra.mxu0 %v443_v37 }
  0xc9   : > { %2528 = vmatprep.subr.bf16.mxu1 %v469_v38  ;;  %2494 = vmatprep.subr.bf16.mxu0 %v444_v43 }
  0xcc   : > { %2529 = vmatpush3.bf16.msra.mxu1 %v469_v38  ;;  %2495 = vmatpush3.bf16.msra.mxu0 %v444_v43 }
  0xcd   : > { %2530 = vmatprep.subr.bf16.mxu1 %v470_v44  ;;  %2496 = vmatprep.subr.bf16.mxu0 %v445_v50 }
  0xd0   : > { %2531 = vmatpush3.bf16.msra.mxu1 %v470_v44  ;;  %2497 = vmatpush3.bf16.msra.mxu0 %v445_v50 }
  0xd1   : > { %2498 = vmatprep.subr.bf16.mxu0 %v446_v56 }
  0xd3   : > { %2533 = vmatmul.mubr.bf16.vlgmr.msra.gmra.mrb[0].mxu1 %v3605_v54 }
  0xd4   : > { %2536 = vmatprep.mubr.bf16.mxu1 %v3607_v55  ;;  %2499 = vmatpush3.bf16.msra.mxu0 %v446_v56 }
  0xd7   : > { %2501 = vmatmul.mubr.bf16.vlgmr.msra.gmra.mrb[0].mxu0 %v3605_v54 }
  0xd8   : > { %2504 = vmatprep.mubr.bf16.mxu0 %v3607_v55 }
  0xdb   : > { %2537 = vmatmul.mubr.bf16.gmra.mrb[4].mxu1 %v3615_v61 }
  0xdc   : > { %2540 = vmatprep.mubr.bf16.mxu1 %v3617_v62 }
  0xdf   : > { %2505 = vmatmul.mubr.bf16.gmra.mrb[4].mxu0 %v3615_v61 }
  0xe0   : > { %2508 = vmatprep.mubr.bf16.mxu0 %v3617_v62 }
  0xe3   : > { %2541 = vmatmul.mubr.bf16.gmra.mrb[8].mxu1 %v3627_v3 }
  0xe4   : > { %2544 = vmatprep.mubr.bf16.mxu1 %v3629_v4 }
  0xe7   : > { %2509 = vmatmul.mubr.bf16.gmra.mrb[8].mxu0 %v3627_v3 }
  0xe8   : > { %2512 = vmatprep.mubr.bf16.mxu0 %v3629_v4 }
  0xeb   : > { %2545 = vmatmul.mubr.bf16.gmra.mrb[12].mxu1 %v3637_v7 }
  0xef   : > { %2513 = vmatmul.mubr.bf16.gmra.mrb[12].mxu0 %v3637_v7 }
  0xf0   : > { %2564 = vmatprep.mubr.bf16.mxu0 %v3597_v13 }
 0x1a6   : > { %v2534_v8 = vpop.f32.mrb[0].mxu1 }
 0x1a7   : > { %v650_v9 = vpop.f32.mrb[1].mxu1 }
 0x1a8   : > { %v2535_v10 = vpop.f32.mrb[2].mxu1 }
 0x1a9   : > { %v819_v11 = vpack.c.bf16 %v2535_v10, %v2534_v8  ;;  %v653_v12 = vpop.f32.mrb[3].mxu1 }
 0x1aa   : > { %v818_v14 = vpack.c.bf16 %v653_v12, %v650_v9  ;;  %v2502_v16 = vpop.f32.mrb[0].mxu0 }
 0x1ab   : > { %v553_v13 = vpop.f32.mrb[1].mxu0  ;;  %v863_v27 = vsel %vm834_vm0, %v819_v11, 0 }
 0x1ac   : > { %1454 = vrot.lane.b32.xlu0 %v818_v14, %s3289_s7  ;;  %2788 = vmatprep.subr.msk.bf16.mxu1 %vm834_vm0, %v818_v14  ;;  %v860_v15 = vsel %vm834_vm0, %v818_v14, 0  ;;  %v2503_v19 = vpop.f32.mrb[2].mxu0 }
 0x1ad   : > { %2581 = vmatpush3.bf16.xpose.msra.mxu1 %v860_v15  ;;  %v3649_v21 = vpack.c.bf16 %v2503_v19, %v2502_v16  ;;  %v556_v22 = vpop.f32.mrb[3].mxu0 }
 0x1ae   : > { %2789 = vmatprep.subr.msk.bf16.mxu1 %vm834_vm0, %v819_v11  ;;  %v2538_v17 = vpop.f32.mrb[4].mxu1  ;;  %v810_v25 = vpack.c.bf16 %v556_v22, %v553_v13 }
 0x1af   : > { %v666_v18 = vpop.f32.mrb[5].mxu1 }
 0x1b0   : > { %1456 = vrot.lane.b32.xlu0 %v819_v11, %s3289_s7  ;;  %v2539_v20 = vpop.f32.mrb[6].mxu1  ;;  %2596 = vmatprep.mubr.msk.bf16.mxu1 %vm834_vm0, %v810_v25 }
 0x1b1   : > { %v821_v23 = vpack.c.bf16 %v2539_v20, %v2538_v17  ;;  %v669_v24 = vpop.f32.mrb[7].mxu1 }
 0x1b2   : > { %v820_v26 = vpack.c.bf16 %v669_v24, %v666_v18  ;;  %v2506_v28 = vpop.f32.mrb[4].mxu0 }
 0x1b3   : > { %v569_v30 = vpop.f32.mrb[5].mxu0  ;;  %v869_v53 = vsel %vm834_vm0, %v821_v23, 0 }
 0x1b4   : > { %1458 = vrot.lane.b32.xlu1 %v820_v26, %s3289_s7  ;;  %v2507_v32 = vpop.f32.mrb[6].mxu0  ;;  %v866_v40 = vsel %vm834_vm0, %v820_v26, 0 }
 0x1b5   : > { %2583 = vmatpush3.bf16.xpose.msra.mxu1 %v863_v27  ;;  %v813_v34 = vpack.c.bf16 %v2507_v32, %v2506_v28  ;;  %v572_v35 = vpop.f32.mrb[7].mxu0  ;;  %v472_v27 = vld [vmem:[#allocation9 + $0x8] sm:$0xff] }
 0x1b6   : > { %2790 = vmatprep.subr.msk.bf16.mxu1 %vm834_vm0, %v820_v26  ;;  %v2542_v29 = vpop.f32.mrb[8].mxu1  ;;  %v812_v38 = vpack.c.bf16 %v572_v35, %v569_v30  ;;  %v471_v26 = vld [vmem:[#allocation9] sm:$0xff]  ;;  %v474_v30 = vld [vmem:[#allocation9 + $0x18] sm:$0xff] }
 0x1b7   : > { %v682_v31 = vpop.f32.mrb[9].mxu1  ;;  %v487_v28 = vpack.c.bf16 %v472_v27, %v471_v26 }
 0x1b8   : > { %1460 = vrot.lane.b32.xlu1 %v821_v23, %s3289_s7  ;;  %v2543_v33 = vpop.f32.mrb[10].mxu1 }
 0x1b9   : > { %v823_v36 = vpack.c.bf16 %v2543_v33, %v2542_v29  ;;  %v685_v37 = vpop.f32.mrb[11].mxu1  ;;  %2548 = vmatprep.subr.bf16.mxu0 %v487_v28  ;;  %v473_v29 = vld [vmem:[#allocation9 + $0x10] sm:$0xff]  ;;  %v476_v33 = vld [vmem:[#allocation9 + $0x28] sm:$0xff] }
 0x1ba   : > { %v822_v39 = vpack.c.bf16 %v685_v37, %v682_v31  ;;  %v2510_v41 = vpop.f32.mrb[8].mxu0  ;;  %2549 = vmatpush3.bf16.msra.mxu0 %v487_v28  ;;  %v475_v31 = vld [vmem:[#allocation9 + $0x20] sm:$0xff]  ;;  %v488_v32 = vpack.c.bf16 %v474_v30, %v473_v29  ;;  %v478_v37 = vld [vmem:[#allocation9 + $0x38] sm:$0xff] }
 0x1bb   : > { %v585_v43 = vpop.f32.mrb[9].mxu0  ;;  %v875_v1 = vsel %vm834_vm0, %v823_v36, 0  ;;  %v489_v35 = vpack.c.bf16 %v476_v33, %v475_v31 }
 0x1bc   : > { %1464 = vrot.lane.b32.xlu1 %v823_v36, %s3289_s7  ;;  %1462 = vrot.lane.b32.xlu0 %v822_v39, %s3289_s7  ;;  %v2511_v45 = vpop.f32.mrb[10].mxu0  ;;  %v872_v0 = vsel %vm834_vm0, %v822_v39, 0 }
 0x1bd   : > { %2585 = vmatpush3.bf16.xpose.msra.mxu1 %v866_v40  ;;  %v815_v47 = vpack.c.bf16 %v2511_v45, %v2510_v41  ;;  %v588_v48 = vpop.f32.mrb[11].mxu0  ;;  %2550 = vmatprep.subr.bf16.mxu0 %v488_v32  ;;  %v479_v40 = vld [vmem:[#allocation9 + $0x40] sm:$0xff]  ;;  %v480_v41 = vld [vmem:[#allocation9 + $0x48] sm:$0xff]  ;;  %v482_v45 = vld [vmem:[#allocation9 + $0x58] sm:$0xff] }
 0x1be   : > { %2791 = vmatprep.subr.msk.bf16.mxu1 %vm834_vm0, %v821_v23  ;;  %v2546_v42 = vpop.f32.mrb[12].mxu1  ;;  %v814_v51 = vpack.c.bf16 %v588_v48, %v585_v43  ;;  %2551 = vmatpush3.bf16.msra.mxu0 %v488_v32  ;;  %v483_v48 = vld [vmem:[#allocation9 + $0x60] sm:$0xff] }
 0x1bf   : > { %v698_v44 = vpop.f32.mrb[13].mxu1  ;;  %2552 = vmatprep.subr.bf16.mxu0 %v489_v35 }
 0x1c0   : > { %v2547_v46 = vpop.f32.mrb[14].mxu1  ;;  %1430 = vrot.lane.b32.xlu0 %v810_v25, %s3289_s7 }
 0x1c1   : > { %v825_v49 = vpack.c.bf16 %v2547_v46, %v2546_v42  ;;  %v701_v50 = vpop.f32.mrb[15].mxu1  ;;  %v491_v42 = vpack.c.bf16 %v480_v41, %v479_v40 }
 0x1c2   : > { %v824_v52 = vpack.c.bf16 %v701_v50, %v698_v44  ;;  %v2514_v56 = vpop.f32.mrb[12].mxu0  ;;  %2553 = vmatpush3.bf16.msra.mxu0 %v489_v35  ;;  %v481_v44 = vld [vmem:[#allocation9 + $0x50] sm:$0xff] }
 0x1c3   : > { %1468 = vrot.lane.b32.xlu1 %v825_v49, %s3289_s7  ;;  %v601_v57 = vpop.f32.mrb[13].mxu0  ;;  %v881_v5 = vsel %vm834_vm0, %v825_v49, 0 }
 0x1c4   : > { %1466 = vrot.lane.b32.xlu0 %v824_v52, %s3289_s7  ;;  %v2515_v58 = vpop.f32.mrb[14].mxu0  ;;  %v878_v2 = vsel %vm834_vm0, %v824_v52, 0 }
 0x1c5   : > { %2587 = vmatpush3.bf16.xpose.msra.mxu1 %v869_v53  ;;  %v817_v59 = vpack.c.bf16 %v2515_v58, %v2514_v56  ;;  %v604_v60 = vpop.f32.mrb[15].mxu0 }
 0x1c6   : > { %2792 = vmatprep.subr.msk.bf16.mxu1 %vm834_vm0, %v822_v39  ;;  %v816_v63 = vpack.c.bf16 %v604_v60, %v601_v57 }
 0x1c7   : > { %1432 = vrot.lane.b32.xlu1 %v3649_v21, %s3289_s7 }
 0x1c8   : > { %1434 = vrot.lane.b32.xlu0 %v812_v38, %s3289_s7 }
 0x1cb   : > { %1436 = vrot.lane.b32.xlu1 %v813_v34, %s3289_s7 }
 0x1cc   : > { %1438 = vrot.lane.b32.xlu0 %v814_v51, %s3289_s7 }
 0x1cd   : > { %2589 = vmatpush3.bf16.xpose.msra.mxu1 %v872_v0 }
 0x1ce   : > { %2793 = vmatprep.subr.msk.bf16.mxu1 %vm834_vm0, %v823_v36  ;;  %v477_v36 = vld [vmem:[#allocation9 + $0x30] sm:$0xff] }
 0x1cf   : > { %1440 = vrot.lane.b32.xlu1 %v815_v47, %s3289_s7  ;;  %v490_v39 = vpack.c.bf16 %v478_v37, %v477_v36 }
 0x1d0   : > { %1442 = vrot.lane.b32.xlu0 %v816_v63, %s3289_s7 }
 0x1d1   : > { %2554 = vmatprep.subr.bf16.mxu0 %v490_v39 }
 0x1d2   : > { %2555 = vmatpush3.bf16.msra.mxu0 %v490_v39 }
 0x1d3   : > { %1444 = vrot.lane.b32.xlu1 %v817_v59, %s3289_s7  ;;  %2556 = vmatprep.subr.bf16.mxu0 %v491_v42 }
 0x1d5   : > { %2591 = vmatpush3.bf16.xpose.msra.mxu1 %v875_v1 }
 0x1d6   : > { %2794 = vmatprep.subr.msk.bf16.mxu1 %vm834_vm0, %v824_v52  ;;  %2557 = vmatpush3.bf16.msra.mxu0 %v491_v42  ;;  %v486_v52 = vld [vmem:[#allocation9 + $0x78] sm:$0xff] }
 0x1dd   : > { %2593 = vmatpush3.bf16.xpose.msra.mxu1 %v878_v2 }
 0x1de   : > { %2795 = vmatprep.subr.msk.bf16.mxu1 %vm834_vm0, %v825_v49  ;;  %v484_v49 = vld [vmem:[#allocation9 + $0x68] sm:$0xff] }
 0x1df   : > { %v493_v50 = vpack.c.bf16 %v484_v49, %v483_v48 }
 0x1e5   : > { %2595 = vmatpush3.bf16.xpose.msra.mxu1 %v881_v5 }
 0x1ec   : > { %2597 = vmatmul.mubr.msk.bf16.vlgmr.msra.gmra.mrb[16].mxu1 %vm834_vm0, %v3649_v21 }
 0x1ed   : > { %2600 = vmatprep.mubr.msk.bf16.mxu1 %vm834_vm0, %v812_v38 }
 0x1f4   : > { %2601 = vmatmul.mubr.msk.bf16.gmra.mrb[20].mxu1 %vm834_vm0, %v813_v34 }
 0x1f5   : > { %2604 = vmatprep.mubr.msk.bf16.mxu1 %vm834_vm0, %v814_v51  ;;  %v485_v51 = vld [vmem:[#allocation9 + $0x70] sm:$0xff] }
 0x1f6   : > { %v494_v56 = vpack.c.bf16 %v486_v52, %v485_v51 }
 0x1fc   : > { %2605 = vmatmul.mubr.msk.bf16.gmra.mrb[24].mxu1 %vm834_vm0, %v815_v47  ;;  %v492_v47 = vpack.c.bf16 %v482_v45, %v481_v44 }
 0x1fd   : > { %2608 = vmatprep.mubr.msk.bf16.mxu1 %vm834_vm0, %v816_v63 }
 0x1fe   : > { %2558 = vmatprep.subr.bf16.mxu0 %v492_v47 }
 0x1ff   : > { %2559 = vmatpush3.bf16.msra.mxu0 %v492_v47 }
 0x200   : > { %2560 = vmatprep.subr.bf16.mxu0 %v493_v50 }
 0x203   : > { %2561 = vmatpush3.bf16.msra.mxu0 %v493_v50 }
 0x204   : > { %2609 = vmatmul.mubr.msk.bf16.gmra.mrb[28].mxu1 %vm834_vm0, %v817_v59  ;;  %2562 = vmatprep.subr.bf16.mxu0 %v494_v56 }
 0x207   : > { %2563 = vmatpush3.bf16.msra.mxu0 %v494_v56 }
 0x20a   : > { %2565 = vmatmul.mubr.bf16.vlgmr.msra.gmra.mrb[16].mxu0 %v3605_v54 }
 0x20b   : > { %2568 = vmatprep.mubr.bf16.mxu0 %v3607_v55 }
 0x212   : > { %2569 = vmatmul.mubr.bf16.gmra.mrb[20].mxu0 %v3615_v61 }
 0x213   : > { %2572 = vmatprep.mubr.bf16.mxu0 %v3617_v62 }
 0x21a   : > { %2573 = vmatmul.mubr.bf16.gmra.mrb[24].mxu0 %v3627_v3 }
 0x21b   : > { %2576 = vmatprep.mubr.bf16.mxu0 %v3629_v4 }
 0x21e   : > { %v1455_v6 = vpop.permute.xlu0 %1454 }
 0x21f   : > { %v1495_v8 = vsel %vm834_vm0, %v1455_v6, 0  ;;  %2796 = vmatprep.subr.msk.bf16.mxu1 %vm834_vm0, %v1455_v6 }
 0x220   : > { %2669 = vmatpush3.bf16.xpose.msra.mxu1 %v1495_v8 }
 0x222   : > { %v1457_v9 = vpop.permute.xlu0 %1456  ;;  %2577 = vmatmul.mubr.bf16.gmra.mrb[28].mxu0 %v3637_v7 }
 0x223   : > { %2797 = vmatprep.subr.msk.bf16.mxu1 %vm834_vm0, %v1457_v9  ;;  %v1498_v10 = vsel %vm834_vm0, %v1457_v9, 0 }
 0x226   : > { %v1459_v11 = vpop.permute.xlu1 %1458 }
 0x227   : > { %v1501_v14 = vsel %vm834_vm0, %v1459_v11, 0 }
 0x228   : > { %2671 = vmatpush3.bf16.xpose.msra.mxu1 %v1498_v10 }
 0x229   : > { %2798 = vmatprep.subr.msk.bf16.mxu1 %vm834_vm0, %v1459_v11 }
 0x22a   : > { %v1461_v15 = vpop.permute.xlu1 %1460 }
 0x22b   : > { %v1504_v17 = vsel %vm834_vm0, %v1461_v15, 0 }
 0x22e   : > { %v1463_v12 = vpop.permute.xlu0 %1462  ;;  %v1465_v18 = vpop.permute.xlu1 %1464 }
 0x22f   : > { %v1507_v13 = vsel %vm834_vm0, %v1463_v12, 0  ;;  %v1510_v20 = vsel %vm834_vm0, %v1465_v18, 0 }
 0x230   : > { %2673 = vmatpush3.bf16.xpose.msra.mxu1 %v1501_v14 }
 0x231   : > { %2799 = vmatprep.subr.msk.bf16.mxu1 %vm834_vm0, %v1461_v15 }
 0x232   : > { %v1431_v16 = vpop.permute.xlu0 %1430 }
 0x233   : > { %2684 = vmatprep.mubr.msk.bf16.mxu1 %vm834_vm0, %v1431_v16 }
 0x235   : > { %v1469_v22 = vpop.permute.xlu1 %1468 }
 0x236   : > { %v1467_v19 = vpop.permute.xlu0 %1466  ;;  %v1516_v23 = vsel %vm834_vm0, %v1469_v22, 0 }
 0x237   : > { %v1513_v21 = vsel %vm834_vm0, %v1467_v19, 0 }
 0x238   : > { %2675 = vmatpush3.bf16.xpose.msra.mxu1 %v1504_v17 }
 0x239   : > { %2800 = vmatprep.subr.msk.bf16.mxu1 %vm834_vm0, %v1463_v12  ;;  %v1433_v25 = vpop.permute.xlu1 %1432 }
 0x23a   : > { %v1435_v24 = vpop.permute.xlu0 %1434 }
 0x23d   : > { %v1437_v38 = vpop.permute.xlu1 %1436 }
 0x23e   : > { %v1439_v34 = vpop.permute.xlu0 %1438 }
 0x240   : > { %2677 = vmatpush3.bf16.xpose.msra.mxu1 %v1507_v13 }
 0x241   : > { %2801 = vmatprep.subr.msk.bf16.mxu1 %vm834_vm0, %v1465_v18  ;;  %v1441_v46 = vpop.permute.xlu1 %1440 }
 0x242   : > { %v1443_v43 = vpop.permute.xlu0 %1442 }
 0x245   : > { %v1445_v53 = vpop.permute.xlu1 %1444 }
 0x248   : > { %2679 = vmatpush3.bf16.xpose.msra.mxu1 %v1510_v20 }
 0x249   : > { %2802 = vmatprep.subr.msk.bf16.mxu1 %vm834_vm0, %v1467_v19 }
 0x250   : > { %2681 = vmatpush3.bf16.xpose.msra.mxu1 %v1513_v21 }
 0x251   : > { %2803 = vmatprep.subr.msk.bf16.mxu1 %vm834_vm0, %v1469_v22 }
 0x258   : > { %2683 = vmatpush3.bf16.xpose.msra.mxu1 %v1516_v23 }
 0x25f   : > { %2685 = vmatmul.mubr.msk.bf16.vlgmr.msra.gmra.mrb[32].mxu1 %vm834_vm0, %v1433_v25 }
 0x260   : > { %2688 = vmatprep.mubr.msk.bf16.mxu1 %vm834_vm0, %v1435_v24 }
 0x267   : > { %2689 = vmatmul.mubr.msk.bf16.gmra.mrb[36].mxu1 %vm834_vm0, %v1437_v38 }
 0x268   : > { %2692 = vmatprep.mubr.msk.bf16.mxu1 %vm834_vm0, %v1439_v34 }
 0x26f   : > { %2693 = vmatmul.mubr.msk.bf16.gmra.mrb[40].mxu1 %vm834_vm0, %v1441_v46 }
 0x270   : > { %2696 = vmatprep.mubr.msk.bf16.mxu1 %vm834_vm0, %v1443_v43 }
 0x277   : > { %2697 = vmatmul.mubr.msk.bf16.gmra.mrb[44].mxu1 %vm834_vm0, %v1445_v53 }
 0x2bf   : > { %v2598_v57 = vpop.f32.mrb[16].mxu1 }
 0x2c0   : > { %v917_v58 = vpop.f32.mrb[17].mxu1  ;;  %v3724_v54 = vmul.f32 0.088388346, %v2598_v57 }
 0x2c1   : > { %v3719_v59 = vmul.f32 0.088388346, %v917_v58  ;;  %v2599_v60 = vpop.f32.mrb[18].mxu1 }
 0x2c2   : > { %v920_v63 = vpop.f32.mrb[19].mxu1  ;;  %v3728_v62 = vmul.f32 0.088388346, %v2599_v60 }
 0x2c3   : > { %v3721_v0 = vmul.f32 0.088388346, %v920_v63  ;;  %996 = vmax.xlane.f32.xlu0 %v3719_v59 }
 0x2c5   : > { %998 = vmax.xlane.f32.xlu1 %v3721_v0 }
 0x2c7   : > { %v2602_v55 = vpop.f32.mrb[20].mxu1  ;;  %1000 = vmax.xlane.f32.xlu0 %v3724_v54 }
 0x2c8   : > { %v933_v61 = vpop.f32.mrb[21].mxu1  ;;  %v3734_v1 = vmul.f32 0.088388346, %v2602_v55 }
 0x2c9   : > { %v3730_v3 = vmul.f32 0.088388346, %v933_v61  ;;  %v2603_v4 = vpop.f32.mrb[22].mxu1 }
 0x2ca   : > { %v936_v7 = vpop.f32.mrb[23].mxu1  ;;  %v3740_v8 = vmul.f32 0.088388346, %v2603_v4 }
 0x2cb   : > { %1004 = vmax.xlane.f32.xlu1 %v3730_v3  ;;  %1002 = vmax.xlane.f32.xlu0 %v3728_v62  ;;  %v3736_v2 = vmul.f32 0.088388346, %v936_v7 }
 0x2cf   : > { %v2606_v5 = vpop.f32.mrb[24].mxu1  ;;  %1008 = vmax.xlane.f32.xlu1 %v3734_v1  ;;  %1006 = vmax.xlane.f32.xlu0 %v3736_v2 }
 0x2d0   : > { %v949_v6 = vpop.f32.mrb[25].mxu1  ;;  %v3746_v12 = vmul.f32 0.088388346, %v2606_v5 }
 0x2d1   : > { %v3742_v9 = vmul.f32 0.088388346, %v949_v6  ;;  %v2607_v10 = vpop.f32.mrb[26].mxu1 }
 0x2d2   : > { %v952_v11 = vpop.f32.mrb[27].mxu1  ;;  %v3752_v17 = vmul.f32 0.088388346, %v2607_v10 }
 0x2d3   : > { %1012 = vmax.xlane.f32.xlu1 %v3742_v9  ;;  %1010 = vmax.xlane.f32.xlu0 %v3740_v8  ;;  %v3748_v14 = vmul.f32 0.088388346, %v952_v11 }
 0x2d7   : > { %1016 = vmax.xlane.f32.xlu1 %v3746_v12  ;;  %1014 = vmax.xlane.f32.xlu0 %v3748_v14  ;;  %v2610_v15 = vpop.f32.mrb[28].mxu1 }
 0x2d8   : > { %v965_v16 = vpop.f32.mrb[29].mxu1  ;;  %v3758_v20 = vmul.f32 0.088388346, %v2610_v15 }
 0x2d9   : > { %v3754_v13 = vmul.f32 0.088388346, %v965_v16  ;;  %v2611_v18 = vpop.f32.mrb[30].mxu1 }
 0x2da   : > { %v968_v19 = vpop.f32.mrb[31].mxu1  ;;  %v3764_v22 = vmul.f32 0.088388346, %v2611_v18 }
 0x2db   : > { %1018 = vmax.xlane.f32.xlu0 %v3752_v17  ;;  %1020 = vmax.xlane.f32.xlu1 %v3754_v13  ;;  %v3760_v21 = vmul.f32 0.088388346, %v968_v19 }
 0x2dd   : > { %v2566_v47 = vpop.f32.mrb[16].mxu0 }
 0x2de   : > { %v747_v48 = vpop.f32.mrb[17].mxu0 }
 0x2df   : > { %1024 = vmax.xlane.f32.xlu1 %v3758_v20  ;;  %1022 = vmax.xlane.f32.xlu0 %v3760_v21  ;;  %v2567_v50 = vpop.f32.mrb[18].mxu0 }
 0x2e0   : > { %v3802_v53 = vpack.c.bf16 %v2567_v50, %v2566_v47  ;;  %v750_v58 = vpop.f32.mrb[19].mxu0 }
 0x2e3   : > { %1026 = vmax.xlane.f32.xlu0 %v3764_v22 }
 0x2e5   : > { %v2570_v4 = vpop.f32.mrb[20].mxu0 }
 0x332   : > { %v3767_v23 = vpop.f32.mrb[32].mxu1 }
 0x333   : > { %v3769_v24 = vpop.f32.mrb[33].mxu1 }
 0x334   : > { %v3771_v25 = vpop.f32.mrb[34].mxu1 }
 0x335   : > { %v3773_v26 = vpop.f32.mrb[35].mxu1 }
 0x33a   : > { %v3775_v27 = vpop.f32.mrb[36].mxu1 }
 0x33b   : > { %v3777_v28 = vpop.f32.mrb[37].mxu1 }
 0x33c   : > { %v3779_v29 = vpop.f32.mrb[38].mxu1 }
 0x33d   : > { %v3781_v30 = vpop.f32.mrb[39].mxu1 }
 0x342   : > { %v3783_v31 = vpop.f32.mrb[40].mxu1 }
 0x343   : > { %v3785_v32 = vpop.f32.mrb[41].mxu1 }
 0x344   : > { %v3787_v33 = vpop.f32.mrb[42].mxu1 }
 0x345   : > { %v3789_v34 = vpop.f32.mrb[43].mxu1 }
 0x34a   : > { %v3791_v35 = vpop.f32.mrb[44].mxu1 }
 0x34b   : > { %v3793_v36 = vpop.f32.mrb[45].mxu1 }
 0x34c   : > { %v3795_v37 = vpop.f32.mrb[46].mxu1 }
 0x34d   : > { %v3797_v38 = vpop.f32.mrb[47].mxu1 }
 0x350   : > { %v997_v39 = vpop.xlane.xlu0 %996 }
 0x351   : > { %v1028_v40 = vsub.f32 %v3719_v59, %v997_v39  ;;  %v3806_v59 = vpack.c.bf16 %v750_v58, %v747_v48 }
 0x352   : > { %v999_v41 = vpop.xlane.xlu1 %998 }
 0x353   : > { %v1044_v42 = vmul.f32 1.442695, %v1028_v40  ;;  %v1029_v43 = vsub.f32 %v3721_v0, %v999_v41  ;;  %2612 = vmatprep.subr.bf16.mxu0 %v3806_v59 }
 0x354   : > { %v1001_v44 = vpop.xlane.xlu0 %1000  ;;  %2613 = vmatpush3.bf16.msra.mxu0 %v3806_v59 }
 0x355   : > { %2913 = vpow2.f32 %v1044_v42  ;;  %v1046_v45 = vmul.f32 1.442695, %v1029_v43  ;;  %v1030_v46 = vsub.f32 %v3724_v54, %v1001_v44  ;;  %2614 = vmatprep.subr.bf16.mxu0 %v3802_v53 }
 0x357   : > { %2915 = vpow2.f32 %v1046_v45  ;;  %v1048_v49 = vmul.f32 1.442695, %v1030_v46 }
 0x358   : > { %v1005_v51 = vpop.xlane.xlu1 %1004  ;;  %v1003_v52 = vpop.xlane.xlu0 %1002  ;;  %2615 = vmatpush3.bf16.msra.mxu0 %v3802_v53 }
 0x359   : > { %2917 = vpow2.f32 %v1048_v49  ;;  %v1032_v56 = vsub.f32 %v3730_v3, %v1005_v51  ;;  %v1031_v57 = vsub.f32 %v3728_v62, %v1003_v52  ;;  %v763_v3 = vpop.f32.mrb[21].mxu0 }
 0x35a   : > { %v2571_v6 = vpop.f32.mrb[22].mxu0 }
 0x35b   : > { %v1052_v60 = vmul.f32 1.442695, %v1032_v56  ;;  %v1050_v63 = vmul.f32 1.442695, %v1031_v57  ;;  %v3816_v15 = vpack.c.bf16 %v2571_v6, %v2570_v4  ;;  %v766_v18 = vpop.f32.mrb[23].mxu0 }
 0x35c   : > { %v1009_v0 = vpop.xlane.xlu1 %1008  ;;  %v1007_v54 = vpop.xlane.xlu0 %1006  ;;  %v3824_v19 = vpack.c.bf16 %v766_v18, %v763_v3 }
 0x35d   : > { %2919 = vpow2.f32 %v1052_v60  ;;  %v1034_v55 = vsub.f32 %v3734_v1, %v1009_v0  ;;  %v1033_v61 = vsub.f32 %v3736_v2, %v1007_v54  ;;  %v2574_v44 = vpop.f32.mrb[24].mxu0 }
 0x35e   : > { %2921 = vpow2.f32 %v1050_v63  ;;  %2616 = vmatprep.subr.bf16.mxu0 %v3824_v19  ;;  %v779_v45 = vpop.f32.mrb[25].mxu0 }
 0x35f   : > { %v3813_v62 = vpop.eup %2913  ;;  %v1056_v7 = vmul.f32 1.442695, %v1034_v55  ;;  %v1054_v5 = vmul.f32 1.442695, %v1033_v61  ;;  %2617 = vmatpush3.bf16.msra.mxu0 %v3824_v19  ;;  %v2575_v49 = vpop.f32.mrb[26].mxu0 }
 0x360   : > { %v1013_v10 = vpop.xlane.xlu1 %1012  ;;  %v1011_v11 = vpop.xlane.xlu0 %1010  ;;  %1076 = vadd.xlane.f32.xlu1 %v3813_v62  ;;  %2618 = vmatprep.subr.bf16.mxu0 %v3816_v15  ;;  %v3839_v52 = vpack.c.bf16 %v2575_v49, %v2574_v44  ;;  %v3904_v49 = vmul.f32 0.088388346, %v3771_v25  ;;  %v3920_v25 = vmul.f32 0.088388346, %v3779_v29  ;;  %v3936_v29 = vmul.f32 0.088388346, %v3787_v33 }
 0x361   : > { %v3818_v1 = vpop.eup %2915  ;;  %2923 = vpow2.f32 %v1056_v7  ;;  %v1036_v2 = vsub.f32 %v3742_v9, %v1013_v10  ;;  %v1035_v16 = vsub.f32 %v3740_v8, %v1011_v11  ;;  %v782_v57 = vpop.f32.mrb[27].mxu0  ;;  %v3952_v33 = vmul.f32 0.088388346, %v3795_v37 }
 0x362   : > { %2925 = vpow2.f32 %v1054_v5  ;;  %1078 = vadd.xlane.f32.xlu0 %v3818_v1  ;;  %v3845_v58 = vpack.c.bf16 %v782_v57, %v779_v45  ;;  %v2578_v4 = vpop.f32.mrb[28].mxu0  ;;  %v3891_v45 = vmul.f32 0.088388346, %v3769_v24  ;;  %v3907_v24 = vmul.f32 0.088388346, %v3777_v28 }
 0x363   : > { %v3826_v39 = vpop.eup %2917  ;;  %v1060_v40 = vmul.f32 1.442695, %v1036_v2  ;;  %v1058_v41 = vmul.f32 1.442695, %v1035_v16  ;;  %2619 = vmatpush3.bf16.msra.mxu0 %v3816_v15  ;;  %v3923_v28 = vmul.f32 0.088388346, %v3785_v32 }
 0x364   : > { %v1017_v42 = vpop.xlane.xlu1 %1016  ;;  %v1015_v43 = vpop.xlane.xlu0 %1014  ;;  %1080 = vadd.xlane.f32.xlu1 %v3826_v39  ;;  %2620 = vmatprep.subr.bf16.mxu0 %v3845_v58  ;;  %v3939_v32 = vmul.f32 0.088388346, %v3793_v36  ;;  %v496_v36 = vld [vmem:[#allocation11 + $0x8] sm:$0xff] }
 0x365   : > { %2927 = vpow2.f32 %v1060_v40  ;;  %v1038_v8 = vsub.f32 %v3746_v12, %v1017_v42  ;;  %v1037_v9 = vsub.f32 %v3748_v14, %v1015_v43 }
 0x366   : > { %2929 = vpow2.f32 %v1058_v41 }
 0x367   : > { %v3834_v46 = vpop.eup %2919  ;;  %v1064_v47 = vmul.f32 1.442695, %v1038_v8  ;;  %v1062_v48 = vmul.f32 1.442695, %v1037_v9  ;;  %2621 = vmatpush3.bf16.msra.mxu0 %v3845_v58 }
 0x368   : > { %v3836_v50 = vpop.eup %2921  ;;  %v1019_v51 = vpop.xlane.xlu0 %1018  ;;  %1084 = vadd.xlane.f32.xlu1 %v3834_v46  ;;  %2622 = vmatprep.subr.bf16.mxu0 %v3839_v52 }
 0x369   : > { %v1021_v12 = vpop.xlane.xlu1 %1020  ;;  %2931 = vpow2.f32 %v1064_v47  ;;  %v1039_v14 = vsub.f32 %v3752_v17, %v1019_v51  ;;  %1082 = vadd.xlane.f32.xlu0 %v3836_v50  ;;  %v3896_v47 = vmul.f32 0.088388346, %v3767_v23  ;;  %v3912_v23 = vmul.f32 0.088388346, %v3775_v27 }
 0x36a   : > { %v1040_v56 = vsub.f32 %v3754_v13, %v1021_v12  ;;  %2933 = vpow2.f32 %v1062_v48  ;;  %v3899_v48 = vmul.f32 0.088388346, %v3773_v26  ;;  %v3915_v26 = vmul.f32 0.088388346, %v3781_v30 }
 0x36b   : > { %v3847_v60 = vpop.eup %2923  ;;  %v1066_v63 = vmul.f32 1.442695, %v1039_v14  ;;  %2623 = vmatpush3.bf16.msra.mxu0 %v3839_v52  ;;  %v3928_v27 = vmul.f32 0.088388346, %v3783_v31  ;;  %v3931_v30 = vmul.f32 0.088388346, %v3789_v34 }
 0x36c   : > { %v1068_v0 = vmul.f32 1.442695, %v1040_v56  ;;  %v3849_v54 = vpop.eup %2925  ;;  %1088 = vadd.xlane.f32.xlu1 %v3847_v60  ;;  %v1023_v17 = vpop.xlane.xlu0 %1022  ;;  %v3944_v31 = vmul.f32 0.088388346, %v3791_v35  ;;  %v3947_v34 = vmul.f32 0.088388346, %v3797_v38 }
 0x36d   : > { %v1025_v55 = vpop.xlane.xlu1 %1024  ;;  %2935 = vpow2.f32 %v1066_v63  ;;  %1086 = vadd.xlane.f32.xlu0 %v3849_v54  ;;  %v1041_v61 = vsub.f32 %v3760_v21, %v1023_v17  ;;  %v495_v35 = vld [vmem:[#allocation11] sm:$0xff] }
 0x36e   : > { %v1042_v13 = vsub.f32 %v3758_v20, %v1025_v55  ;;  %2937 = vpow2.f32 %v1068_v0  ;;  %v795_v20 = vpop.f32.mrb[29].mxu0  ;;  %v511_v37 = vpack.c.bf16 %v496_v36, %v495_v35 }
 0x36f   : > { %v3858_v3 = vpop.eup %2927  ;;  %v1070_v5 = vmul.f32 1.442695, %v1041_v61  ;;  %v2579_v11 = vpop.f32.mrb[30].mxu0  ;;  %v497_v61 = vld [vmem:[#allocation11 + $0x10] sm:$0xff] }
 0x370   : > { %v1072_v7 = vmul.f32 1.442695, %v1042_v13  ;;  %v3860_v6 = vpop.eup %2929  ;;  %1092 = vadd.xlane.f32.xlu1 %v3858_v3  ;;  %v1027_v10 = vpop.xlane.xlu0 %1026  ;;  %v3866_v2 = vpack.c.bf16 %v2579_v11, %v2578_v4  ;;  %v498_v4 = vld [vmem:[#allocation11 + $0x18] sm:$0xff]  ;;  %v499_v11 = vld [vmem:[#allocation11 + $0x20] sm:$0xff] }
 0x371   : > { %1090 = vadd.xlane.f32.xlu0 %v3860_v6  ;;  %v1043_v21 = vsub.f32 %v3764_v22, %v1027_v10  ;;  %v798_v40 = vpop.f32.mrb[31].mxu0 }
 0x372   : > { %2939 = vpow2.f32 %v1072_v7  ;;  %v832_v42 = vpack.c.bf16 %v798_v40, %v795_v20  ;;  %v512_v20 = vpack.c.bf16 %v498_v4, %v497_v61 }
 0x373   : > { %2941 = vpow2.f32 %v1070_v5  ;;  %v3868_v16 = vpop.eup %2931  ;;  %v1074_v18 = vmul.f32 1.442695, %v1043_v21 }
 0x374   : > { %v3870_v41 = vpop.eup %2933  ;;  %1096 = vadd.xlane.f32.xlu1 %v3868_v16  ;;  %2624 = vmatprep.subr.bf16.mxu0 %v832_v42 }
 0x375   : > { %2943 = vpow2.f32 %v1074_v18  ;;  %1094 = vadd.xlane.f32.xlu0 %v3870_v41  ;;  %2625 = vmatpush3.bf16.msra.mxu0 %v832_v42  ;;  %v500_v18 = vld [vmem:[#allocation11 + $0x28] sm:$0xff] }
 0x376   : > { %2626 = vmatprep.subr.bf16.mxu0 %v3866_v2 }
 0x377   : > { %v3874_v22 = vpop.eup %2935 }
 0x378   : > { %v3876_v43 = vpop.eup %2937 }
 0x379   : > { %1100 = vadd.xlane.f32.xlu1 %v3876_v43  ;;  %1098 = vadd.xlane.f32.xlu0 %v3874_v22 }
 0x37a   : > { %2627 = vmatpush3.bf16.msra.mxu0 %v3866_v2 }
 0x37b   : > { %2644 = vmatprep.subr.bf16.mxu0 %v511_v37 }
 0x37c   : > { %v3881_v8 = vpop.eup %2939 }
 0x37d   : > { %v3884_v9 = vpop.eup %2941  ;;  %1104 = vadd.xlane.f32.xlu1 %v3881_v8 }
 0x37e   : > { %1102 = vadd.xlane.f32.xlu0 %v3884_v9 }
 0x37f   : > { %v3888_v44 = vpop.eup %2943 }
 0x381   : > { %1631 = vmax.xlane.f32.xlu1 %v3891_v45 }
 0x382   : > { %1106 = vadd.xlane.f32.xlu0 %v3888_v44 }
 0x385   : > { %1635 = vmax.xlane.f32.xlu1 %v3896_v47 }
 0x386   : > { %1633 = vmax.xlane.f32.xlu0 %v3899_v48 }
 0x389   : > { %1639 = vmax.xlane.f32.xlu1 %v3907_v24 }
 0x38a   : > { %1637 = vmax.xlane.f32.xlu0 %v3904_v49 }
 0x38d   : > { %1643 = vmax.xlane.f32.xlu1 %v3912_v23 }
 0x38e   : > { %1641 = vmax.xlane.f32.xlu0 %v3915_v26 }
 0x391   : > { %1647 = vmax.xlane.f32.xlu1 %v3923_v28 }
 0x392   : > { %1645 = vmax.xlane.f32.xlu0 %v3920_v25 }
 0x395   : > { %1651 = vmax.xlane.f32.xlu1 %v3928_v27 }
 0x396   : > { %1649 = vmax.xlane.f32.xlu0 %v3931_v30 }
 0x399   : > { %1655 = vmax.xlane.f32.xlu1 %v3939_v32 }
 0x39a   : > { %1653 = vmax.xlane.f32.xlu0 %v3936_v29 }
 0x39d   : > { %1659 = vmax.xlane.f32.xlu1 %v3944_v31 }
 0x39e   : > { %1657 = vmax.xlane.f32.xlu0 %v3947_v34 }
 0x3a2   : > { %1661 = vmax.xlane.f32.xlu0 %v3952_v33 }
 0x3ae   : > { %1791 = vrot.lane.b32.xlu1 %v3806_v59, %s3289_s7 }
 0x3b2   : > { %1793 = vrot.lane.b32.xlu1 %v3802_v53, %s3289_s7 }
 0x3b6   : > { %1797 = vrot.lane.b32.xlu1 %v3816_v15, %s3289_s7 }
 0x3b8   : > { %1795 = vrot.lane.b32.xlu0 %v3824_v19, %s3289_s7 }
 0x3ba   : > { %1803 = vrot.lane.b32.xlu1 %v832_v42, %s3289_s7 }
 0x3bc   : > { %1799 = vrot.lane.b32.xlu0 %v3845_v58, %s3289_s7 }
 0x3c0   : > { %1801 = vrot.lane.b32.xlu0 %v3839_v52, %s3289_s7 }
 0x3ed   : > { %v1077_v38 = vpop.xlane.xlu1 %1076 }
 0x3ee   : > { %2945 = vrcp.f32 %v1077_v38 }
 0x3ef   : > { %v1079_v53 = vpop.xlane.xlu0 %1078 }
 0x3f0   : > { %2947 = vrcp.f32 %v1079_v53 }
 0x3f1   : > { %v1081_v59 = vpop.xlane.xlu1 %1080 }
 0x3f2   : > { %2949 = vrcp.f32 %v1081_v59  ;;  %v501_v59 = vld [vmem:[#allocation11 + $0x30] sm:$0xff] }
 0x3f5   : > { %v1085_v15 = vpop.xlane.xlu1 %1084 }
 0x3f6   : > { %v1083_v19 = vpop.xlane.xlu0 %1082 }
 0x3f7   : > { %2951 = vrcp.f32 %v1083_v19 }
 0x3f8   : > { %v2946_v51 = vpop.eup %2945  ;;  %2953 = vrcp.f32 %v1085_v15  ;;  %v502_v15 = vld [vmem:[#allocation11 + $0x38] sm:$0xff] }
 0x3f9   : > { %v1089_v12 = vpop.xlane.xlu1 %1088  ;;  %v1124_v52 = vmul.f32 %v2946_v51, %v3813_v62 }
 0x3fa   : > { %v2948_v14 = vpop.eup %2947  ;;  %v1087_v56 = vpop.xlane.xlu0 %1086 }
 0x3fb   : > { %2955 = vrcp.f32 %v1087_v56  ;;  %v1125_v57 = vmul.f32 %v2948_v14, %v3818_v1 }
 0x3fc   : > { %2957 = vrcp.f32 %v1089_v12  ;;  %v2950_v55 = vpop.eup %2949 }
 0x3fd   : > { %v1093_v58 = vpop.xlane.xlu1 %1092  ;;  %v1140_v63 = vpack.c.bf16 %v1125_v57, %v1124_v52  ;;  %v1126_v7 = vmul.f32 %v2950_v55, %v3826_v39 }
 0x3fe   : > { %v1091_v0 = vpop.xlane.xlu0 %1090 }
 0x3ff   : > { %2959 = vrcp.f32 %v1091_v0  ;;  %2628 = vmatprep.mubr.bf16.mxu0 %v1140_v63 }
 0x400   : > { %2961 = vrcp.f32 %v1093_v58 }
 0x401   : > { %v2952_v17 = vpop.eup %2951  ;;  %v1097_v13 = vpop.xlane.xlu1 %1096 }
 0x402   : > { %v1127_v5 = vmul.f32 %v2952_v17, %v3836_v50  ;;  %v1095_v10 = vpop.xlane.xlu0 %1094  ;;  %v2954_v62 = vpop.eup %2953  ;;  %v513_v50 = vpack.c.bf16 %v500_v18, %v499_v11 }
 0x403   : > { %2963 = vrcp.f32 %v1095_v10  ;;  %v1128_v35 = vmul.f32 %v2954_v62, %v3834_v46 }
 0x404   : > { %v1141_v1 = vpack.c.bf16 %v1127_v5, %v1126_v7  ;;  %2965 = vrcp.f32 %v1097_v13 }
 0x405   : > { %v2956_v21 = vpop.eup %2955 }
 0x406   : > { %v1101_v40 = vpop.xlane.xlu1 %1100  ;;  %v1099_v42 = vpop.xlane.xlu0 %1098  ;;  %2629 = vmatmul.mubr.bf16.vlgmr.msra.gmra.mrb[32].mxu0 %v1141_v1  ;;  %v1129_v36 = vmul.f32 %v2956_v21, %v3849_v54 }
 0x407   : > { %v2958_v38 = vpop.eup %2957  ;;  %2645 = vmatpush3.bf16.msra.mxu0 %v511_v37  ;;  %2967 = vrcp.f32 %v1099_v42  ;;  %v514_v37 = vpack.c.bf16 %v502_v15, %v501_v59 }
 0x408   : > { %v1142_v39 = vpack.c.bf16 %v1129_v36, %v1128_v35  ;;  %2646 = vmatprep.subr.bf16.mxu0 %v512_v20  ;;  %2969 = vrcp.f32 %v1101_v40  ;;  %v1130_v12 = vmul.f32 %v2958_v38, %v3847_v60 }
 0x409   : > { %v2960_v53 = vpop.eup %2959 }
 0x40a   : > { %v1105_v19 = vpop.xlane.xlu1 %1104  ;;  %2632 = vmatprep.mubr.bf16.mxu0 %v1142_v39  ;;  %v1131_v14 = vmul.f32 %v2960_v53, %v3860_v6  ;;  %v2962_v46 = vpop.eup %2961 }
 0x40b   : > { %v1103_v51 = vpop.xlane.xlu0 %1102  ;;  %2647 = vmatpush3.bf16.msra.mxu0 %v512_v20  ;;  %v1132_v58 = vmul.f32 %v2962_v46, %v3858_v3 }
 0x40c   : > { %2971 = vrcp.f32 %v1103_v51  ;;  %v1143_v54 = vpack.c.bf16 %v1131_v14, %v1130_v12  ;;  %2648 = vmatprep.subr.bf16.mxu0 %v513_v50 }
 0x40d   : > { %v2964_v56 = vpop.eup %2963  ;;  %2973 = vrcp.f32 %v1105_v19 }
 0x40e   : > { %v1632_v52 = vpop.xlane.xlu1 %1631  ;;  %2633 = vmatmul.mubr.bf16.gmra.mrb[36].mxu0 %v1143_v54  ;;  %v1133_v63 = vmul.f32 %v2964_v56, %v3870_v41  ;;  %v2966_v60 = vpop.eup %2965 }
 0x40f   : > { %v1107_v57 = vpop.xlane.xlu0 %1106  ;;  %2649 = vmatpush3.bf16.msra.mxu0 %v513_v50  ;;  %v1663_v55 = vsub.f32 %v3891_v45, %v1632_v52  ;;  %v1134_v4 = vmul.f32 %v2966_v60, %v3868_v16 }
 0x410   : > { %2975 = vrcp.f32 %v1107_v57  ;;  %v1144_v0 = vpack.c.bf16 %v1133_v63, %v1132_v58  ;;  %2650 = vmatprep.subr.bf16.mxu0 %v514_v37 }
 0x411   : > { %v2968_v6 = vpop.eup %2967  ;;  %v1679_v62 = vmul.f32 1.442695, %v1663_v55 }
 0x412   : > { %v1636_v17 = vpop.xlane.xlu1 %1635  ;;  %2636 = vmatprep.mubr.bf16.mxu0 %v1144_v0  ;;  %v1135_v7 = vmul.f32 %v2968_v6, %v3874_v22  ;;  %v2970_v3 = vpop.eup %2969 }
 0x413   : > { %v1634_v13 = vpop.xlane.xlu0 %1633  ;;  %v1665_v61 = vsub.f32 %v3896_v47, %v1636_v17  ;;  %2651 = vmatpush3.bf16.msra.mxu0 %v514_v37  ;;  %v1136_v11 = vmul.f32 %v2970_v3, %v3876_v43 }
 0x414   : > { %v1145_v5 = vpack.c.bf16 %v1135_v7, %v1134_v4  ;;  %v1664_v22 = vsub.f32 %v3899_v48, %v1634_v13 }
 0x415   : > { %v1683_v41 = vmul.f32 1.442695, %v1665_v61 }
 0x416   : > { %v2972_v10 = vpop.eup %2971  ;;  %v1640_v1 = vpop.xlane.xlu1 %1639  ;;  %2637 = vmatmul.mubr.bf16.gmra.mrb[40].mxu0 %v1145_v5 }
 0x417   : > { %v1638_v20 = vpop.xlane.xlu0 %1637  ;;  %v2974_v21 = vpop.eup %2973  ;;  %2977 = vpow2.f32 %v1683_v41  ;;  %v1137_v47 = vmul.f32 %v2972_v10, %v3884_v9  ;;  %v1667_v39 = vsub.f32 %v3907_v24, %v1640_v1  ;;  %v1681_v9 = vmul.f32 1.442695, %v1664_v22 }
 0x418   : > { %v1666_v45 = vsub.f32 %v3904_v49, %v1638_v20  ;;  %v1138_v36 = vmul.f32 %v2974_v21, %v3881_v8  ;;  %2979 = vpow2.f32 %v1679_v62 }
 0x419   : > { %v1146_v18 = vpack.c.bf16 %v1137_v47, %v1136_v11  ;;  %v1687_v15 = vmul.f32 1.442695, %v1667_v39 }
 0x41a   : > { %v2976_v16 = vpop.eup %2975  ;;  %v1685_v40 = vmul.f32 1.442695, %v1666_v45  ;;  %v1644_v42 = vpop.xlane.xlu1 %1643 }
 0x41b   : > { %v1642_v35 = vpop.xlane.xlu0 %1641  ;;  %v1139_v38 = vmul.f32 %v2976_v16, %v3888_v44  ;;  %v1669_v49 = vsub.f32 %v3912_v23, %v1644_v42  ;;  %2640 = vmatprep.mubr.bf16.mxu0 %v1146_v18 }
 0x41c   : > { %2981 = vpow2.f32 %v1685_v40  ;;  %v1668_v53 = vsub.f32 %v3915_v26, %v1642_v35 }
 0x41d   : > { %v1147_v43 = vpack.c.bf16 %v1139_v38, %v1138_v36  ;;  %v1691_v50 = vmul.f32 1.442695, %v1669_v49 }
 0x41e   : > { %v1648_v48 = vpop.xlane.xlu1 %1647  ;;  %v1689_v24 = vmul.f32 1.442695, %v1668_v53 }
 0x41f   : > { %v1646_v59 = vpop.xlane.xlu0 %1645  ;;  %2983 = vpow2.f32 %v1691_v50  ;;  %2641 = vmatmul.mubr.bf16.gmra.mrb[44].mxu0 %v1147_v43 }
 0x420   : > { %v1670_v8 = vsub.f32 %v3920_v25, %v1646_v59  ;;  %2985 = vpow2.f32 %v1681_v9  ;;  %v1671_v25 = vsub.f32 %v3923_v28, %v1648_v48 }
 0x421   : > { %v3992_v44 = vpop.eup %2977  ;;  %2987 = vpow2.f32 %v1687_v15 }
 0x422   : > { %v1652_v19 = vpop.xlane.xlu1 %1651  ;;  %1715 = vadd.xlane.f32.xlu0 %v3992_v44  ;;  %v1693_v51 = vmul.f32 1.442695, %v1670_v8  ;;  %v3997_v14 = vpop.eup %2979  ;;  %2989 = vpow2.f32 %v1689_v24  ;;  %v1695_v58 = vmul.f32 1.442695, %v1671_v25 }
 0x423   : > { %v1650_v23 = vpop.xlane.xlu0 %1649  ;;  %v1673_v12 = vsub.f32 %v3928_v27, %v1652_v19 }
 0x424   : > { %v1672_v26 = vsub.f32 %v3931_v30, %v1650_v23  ;;  %2991 = vpow2.f32 %v1693_v51 }
 0x425   : > { %v1699_v46 = vmul.f32 1.442695, %v1673_v12 }
 0x426   : > { %v1656_v54 = vpop.xlane.xlu1 %1655  ;;  %1711 = vadd.xlane.f32.xlu0 %v3997_v14  ;;  %v1697_v56 = vmul.f32 1.442695, %v1672_v26  ;;  %v4001_v52 = vpop.eup %2981 }
 0x427   : > { %v1654_v37 = vpop.xlane.xlu0 %1653  ;;  %2993 = vpow2.f32 %v1699_v46  ;;  %v1675_v61 = vsub.f32 %v3939_v32, %v1656_v54 }
 0x428   : > { %v1674_v27 = vsub.f32 %v3936_v29, %v1654_v37  ;;  %2995 = vpow2.f32 %v1697_v56 }
 0x429   : > { %v4003_v57 = vpop.eup %2983  ;;  %2997 = vpow2.f32 %v1695_v58  ;;  %v1703_v3 = vmul.f32 1.442695, %v1675_v61 }
 0x42a   : > { %v1660_v30 = vpop.xlane.xlu1 %1659  ;;  %1717 = vadd.xlane.f32.xlu0 %v4001_v52  ;;  %1723 = vadd.xlane.f32.xlu1 %v4003_v57  ;;  %v4010_v0 = vpop.eup %2985  ;;  %v1701_v17 = vmul.f32 1.442695, %v1674_v27 }
 0x42b   : > { %v1658_v63 = vpop.xlane.xlu0 %1657  ;;  %v1677_v28 = vsub.f32 %v3944_v31, %v1660_v30  ;;  %v4012_v6 = vpop.eup %2987 }
 0x42c   : > { %v1676_v60 = vsub.f32 %v3947_v34, %v1658_v63  ;;  %v4021_v34 = vpop.eup %2989 }
 0x42d   : > { %v1707_v55 = vmul.f32 1.442695, %v1677_v28 }
 0x42e   : > { %1713 = vadd.xlane.f32.xlu0 %v4010_v0  ;;  %1719 = vadd.xlane.f32.xlu1 %v4012_v6  ;;  %v4016_v29 = vpop.permute.xlu1 %1791  ;;  %v1705_v31 = vmul.f32 1.442695, %v1676_v60  ;;  %v4024_v4 = vpop.eup %2991 }
 0x42f   : > { %v1662_v13 = vpop.xlane.xlu0 %1661  ;;  %2999 = vpow2.f32 %v1707_v55  ;;  %2756 = vmatprep.subr.bf16.mxu1 %v4016_v29  ;;  %2700 = vmatprep.subr.bf16.mxu0 %v4016_v29 }
 0x430   : > { %2764 = vmatpush3.bf16.msra.mxu1 %v4016_v29  ;;  %3001 = vpow2.f32 %v1701_v17  ;;  %v1678_v41 = vsub.f32 %v3952_v33, %v1662_v13 }
 0x431   : > { %3003 = vpow2.f32 %v1705_v31  ;;  %v4034_v5 = vpop.eup %2993 }
 0x432   : > { %1721 = vadd.xlane.f32.xlu0 %v4021_v34  ;;  %1725 = vadd.xlane.f32.xlu1 %v4024_v4  ;;  %v4028_v7 = vpop.permute.xlu1 %1793  ;;  %v4037_v10 = vpop.eup %2995  ;;  %3005 = vpow2.f32 %v1703_v3  ;;  %v1709_v1 = vmul.f32 1.442695, %v1678_v41 }
 0x433   : > { %v4030_v32 = vpop.permute.xlu0 %1795  ;;  %2757 = vmatprep.subr.bf16.mxu1 %v4028_v7  ;;  %v2998_v20 = vpop.eup %2997 }
 0x434   : > { %2765 = vmatpush3.bf16.msra.mxu1 %v4028_v7  ;;  %3007 = vpow2.f32 %v1709_v1 }
 0x435   : > { %2758 = vmatprep.subr.bf16.mxu1 %v4030_v32 }
 0x436   : > { %1729 = vadd.xlane.f32.xlu0 %v4037_v10  ;;  %1731 = vadd.xlane.f32.xlu1 %v4034_v5  ;;  %v4042_v62 = vpop.permute.xlu1 %1797 }
 0x437   : > { %v4045_v33 = vpop.permute.xlu0 %1799 }
 0x438   : > { %2766 = vmatpush3.bf16.msra.mxu1 %v4030_v32 }
 0x439   : > { %v4047_v21 = vpop.eup %2999  ;;  %2759 = vmatprep.subr.bf16.mxu1 %v4042_v62 }
 0x43a   : > { %1739 = vadd.xlane.f32.xlu0 %v4047_v21  ;;  %1727 = vadd.xlane.f32.xlu1 %v2998_v20  ;;  %v3002_v45 = vpop.eup %3001  ;;  %v4057_v18 = vpop.permute.xlu1 %1803 }
 0x43b   : > { %v3004_v11 = vpop.eup %3003  ;;  %v4053_v47 = vpop.permute.xlu0 %1801 }
 0x43c   : > { %2767 = vmatpush3.bf16.msra.mxu1 %v4042_v62  ;;  %v3006_v16 = vpop.eup %3005 }
 0x43d   : > { %2760 = vmatprep.subr.bf16.mxu1 %v4045_v33 }
 0x43e   : > { %1737 = vadd.xlane.f32.xlu0 %v3004_v11  ;;  %1733 = vadd.xlane.f32.xlu1 %v3002_v45  ;;  %v3008_v22 = vpop.eup %3007 }
 0x440   : > { %2768 = vmatpush3.bf16.msra.mxu1 %v4045_v33 }
 0x441   : > { %2761 = vmatprep.subr.bf16.mxu1 %v4053_v47 }
 0x442   : > { %1735 = vadd.xlane.f32.xlu1 %v3006_v16 }
 0x444   : > { %2769 = vmatpush3.bf16.msra.mxu1 %v4053_v47 }
 0x445   : > { %2762 = vmatprep.subr.bf16.mxu1 %v4057_v18 }
 0x446   : > { %1741 = vadd.xlane.f32.xlu1 %v3008_v22 }
 0x448   : > { %2770 = vmatpush3.bf16.msra.mxu1 %v4057_v18 }
 0x454   : > { %1805 = vrot.lane.b32.xlu0 %v3866_v2, %s3289_s7 }
 0x4af   : > { %v4064_v40 = vpop.xlane.xlu0 %1715 }
 0x4b3   : > { %v4066_v42 = vpop.xlane.xlu0 %1711 }
 0x4b7   : > { %v4068_v35 = vpop.xlane.xlu0 %1717  ;;  %v4070_v36 = vpop.xlane.xlu1 %1723 }
 0x4bb   : > { %v4072_v38 = vpop.xlane.xlu0 %1713  ;;  %v4074_v39 = vpop.xlane.xlu1 %1719 }
 0x4bf   : > { %v4076_v49 = vpop.xlane.xlu0 %1721  ;;  %v4078_v43 = vpop.xlane.xlu1 %1725 }
 0x4c3   : > { %v1730_v50 = vpop.xlane.xlu0 %1729  ;;  %v1732_v9 = vpop.xlane.xlu1 %1731 }
 0x4c4   : > { %3009 = vrcp.f32 %v1730_v50 }
 0x4c7   : > { %v1740_v2 = vpop.xlane.xlu0 %1739  ;;  %v1728_v53 = vpop.xlane.xlu1 %1727 }
 0x4c8   : > { %3011 = vrcp.f32 %v1728_v53 }
 0x4c9   : > { %3013 = vrcp.f32 %v1732_v9 }
 0x4cb   : > { %v1738_v48 = vpop.xlane.xlu0 %1737  ;;  %v1734_v59 = vpop.xlane.xlu1 %1733 }
 0x4cc   : > { %3015 = vrcp.f32 %v1734_v59 }
 0x4cd   : > { %3017 = vrcp.f32 %v1738_v48 }
 0x4ce   : > { %v3010_v24 = vpop.eup %3009 }
 0x4cf   : > { %v4080_v15 = vpop.permute.xlu0 %1805  ;;  %v1736_v8 = vpop.xlane.xlu1 %1735  ;;  %v1768_v12 = vmul.f32 %v3010_v24, %v4037_v10 }
 0x4d0   : > { %3019 = vrcp.f32 %v1736_v8  ;;  %2763 = vmatprep.subr.bf16.mxu1 %v4080_v15 }
 0x4d1   : > { %2771 = vmatpush3.bf16.msra.mxu1 %v4080_v15  ;;  %3021 = vrcp.f32 %v1740_v2 }
 0x4d2   : > { %v3012_v19 = vpop.eup %3011 }
 0x4d3   : > { %v1742_v23 = vpop.xlane.xlu1 %1741  ;;  %v1767_v51 = vmul.f32 %v3012_v19, %v2998_v20  ;;  %v3014_v26 = vpop.eup %3013 }
 0x4d4   : > { %3023 = vrcp.f32 %v1742_v23  ;;  %v1769_v37 = vmul.f32 %v3014_v26, %v4034_v5 }
 0x4d5   : > { %v1779_v25 = vpack.c.bf16 %v1768_v12, %v1767_v51  ;;  %3025 = vrcp.f32 %v4072_v38 }
 0x4d6   : > { %v3016_v46 = vpop.eup %3015  ;;  %3027 = vrcp.f32 %v4066_v42 }
 0x4d7   : > { %v3018_v54 = vpop.eup %3017  ;;  %v1770_v56 = vmul.f32 %v3016_v46, %v3002_v45  ;;  %2724 = vmatprep.mubr.bf16.mxu1 %v1779_v25  ;;  %3029 = vrcp.f32 %v4068_v35  ;;  %v503_v46 = vld [vmem:[#allocation11 + $0x40] sm:$0xff] }
 0x4d8   : > { %v1772_v55 = vmul.f32 %v3018_v54, %v3004_v11  ;;  %3031 = vrcp.f32 %v4076_v49  ;;  %v505_v54 = vld [vmem:[#allocation11 + $0x50] sm:$0xff] }
 0x4d9   : > { %v2630_v58 = vpop.f32.mrb[32].mxu0  ;;  %v1780_v63 = vpack.c.bf16 %v1770_v56, %v1769_v37  ;;  %3033 = vrcp.f32 %v4064_v40  ;;  %v506_v37 = vld [vmem:[#allocation11 + $0x58] sm:$0xff]  ;;  %v507_v56 = vld [vmem:[#allocation11 + $0x60] sm:$0xff] }
 0x4da   : > { %v3020_v27 = vpop.eup %3019  ;;  %v1182_v30 = vpop.f32.mrb[33].mxu0  ;;  %3035 = vrcp.f32 %v4074_v39 }
 0x4db   : > { %v2631_v28 = vpop.f32.mrb[34].mxu0  ;;  %v1771_v60 = vmul.f32 %v3020_v27, %v3006_v16  ;;  %v3022_v17 = vpop.eup %3021  ;;  %2725 = vmatmul.mubr.bf16.vlgmr.msra.gmra.mrb[48].mxu1 %v1780_v63  ;;  %3037 = vrcp.f32 %v4078_v43  ;;  %v510_v27 = vld [vmem:[#allocation11 + $0x78] sm:$0xff] }
 0x4dc   : > { %v1262_v13 = vpack.c.bf16 %v2631_v28, %v2630_v58  ;;  %v1185_v61 = vpop.f32.mrb[35].mxu0  ;;  %v1773_v5 = vmul.f32 %v3022_v17, %v4047_v21  ;;  %3039 = vrcp.f32 %v4070_v36 }
 0x4dd   : > { %v1261_v31 = vpack.c.bf16 %v1185_v61, %v1182_v30  ;;  %v1781_v3 = vpack.c.bf16 %v1772_v55, %v1771_v60 }
 0x4de   : > { %v3024_v41 = vpop.eup %3023 }
 0x4df   : > { %2652 = vmatprep.mubr.msk.bf16.mxu0 %vm834_vm0, %v1261_v31  ;;  %2728 = vmatprep.mubr.bf16.mxu1 %v1781_v3  ;;  %v1774_v10 = vmul.f32 %v3024_v41, %v3008_v22 }
 0x4e0   : > { %2653 = vmatmul.mubr.msk.bf16.vlgmr.msra.gmra.mrb[48].mxu0 %vm834_vm0, %v1262_v13 }
 0x4e1   : > { %2701 = vmatpush3.bf16.msra.mxu0 %v4016_v29  ;;  %v2634_v1 = vpop.f32.mrb[36].mxu0  ;;  %v1782_v20 = vpack.c.bf16 %v1774_v10, %v1773_v5 }
 0x4e2   : > { %2702 = vmatprep.subr.bf16.mxu0 %v4028_v7  ;;  %v1198_v45 = vpop.f32.mrb[37].mxu0 }
 0x4e3   : > { %v2635_v11 = vpop.f32.mrb[38].mxu0  ;;  %2729 = vmatmul.mubr.bf16.gmra.mrb[52].mxu1 %v1782_v20 }
 0x4e4   : > { %v1264_v16 = vpack.c.bf16 %v2635_v11, %v2634_v1  ;;  %v1201_v50 = vpop.f32.mrb[39].mxu0 }
 0x4e5   : > { %v1263_v9 = vpack.c.bf16 %v1201_v50, %v1198_v45  ;;  %2703 = vmatpush3.bf16.msra.mxu0 %v4028_v7 }
 0x4e6   : > { %2704 = vmatprep.subr.bf16.mxu0 %v4030_v32 }
 0x4e7   : > { %2656 = vmatprep.mubr.msk.bf16.mxu0 %vm834_vm0, %v1263_v9 }
 0x4e8   : > { %2657 = vmatmul.mubr.msk.bf16.gmra.mrb[52].mxu0 %vm834_vm0, %v1264_v16 }
 0x4e9   : > { %2705 = vmatpush3.bf16.msra.mxu0 %v4030_v32  ;;  %v2638_v29 = vpop.f32.mrb[40].mxu0  ;;  %v3026_v32 = vpop.eup %3025 }
 0x4ea   : > { %2706 = vmatprep.subr.bf16.mxu0 %v4042_v62  ;;  %v1214_v21 = vpop.f32.mrb[41].mxu0  ;;  %v1760_v48 = vmul.f32 %v3026_v32, %v4010_v0 }
 0x4eb   : > { %v2639_v22 = vpop.f32.mrb[42].mxu0 }
 0x4ec   : > { %v1266_v2 = vpack.c.bf16 %v2639_v22, %v2638_v29  ;;  %v1217_v53 = vpop.f32.mrb[43].mxu0 }
 0x4ed   : > { %2707 = vmatpush3.bf16.msra.mxu0 %v4042_v62  ;;  %v1265_v7 = vpack.c.bf16 %v1217_v53, %v1214_v21  ;;  %v3028_v62 = vpop.eup %3027  ;;  %v2340_v53 = vld [vmem:[%s4255_s30] ss:$0 sm:$0xff] }
 0x4ee   : > { %2708 = vmatprep.subr.bf16.mxu0 %v4045_v33  ;;  %v1759_v39 = vmul.f32 %v3028_v62, %v3997_v14 }
 0x4ef   : > { %2660 = vmatprep.mubr.msk.bf16.mxu0 %vm834_vm0, %v1265_v7 }
 0x4f0   : > { %2661 = vmatmul.mubr.msk.bf16.gmra.mrb[56].mxu0 %vm834_vm0, %v1266_v2  ;;  %v1775_v8 = vpack.c.bf16 %v1760_v48, %v1759_v39 }
 0x4f1   : > { %2709 = vmatpush3.bf16.msra.mxu0 %v4045_v33  ;;  %v3030_v33 = vpop.eup %3029 }
 0x4f2   : > { %v2642_v42 = vpop.f32.mrb[44].mxu0  ;;  %2710 = vmatprep.subr.bf16.mxu0 %v4053_v47  ;;  %v3032_v24 = vpop.eup %3031 }
 0x4f3   : > { %v1230_v35 = vpop.f32.mrb[45].mxu0  ;;  %v3034_v0 = vpop.eup %3033  ;;  %v1764_v14 = vmul.f32 %v3032_v24, %v4021_v34  ;;  %v504_v34 = vld [vmem:[#allocation11 + $0x48] sm:$0xff] }
 0x4f4   : > { %v2643_v38 = vpop.f32.mrb[46].mxu0  ;;  %v3036_v43 = vpop.eup %3035  ;;  %v1761_v19 = vmul.f32 %v3034_v0, %v3992_v44  ;;  %v515_v44 = vpack.c.bf16 %v504_v34, %v503_v46 }
 0x4f5   : > { %v1268_v49 = vpack.c.bf16 %v2643_v38, %v2642_v42  ;;  %v1233_v59 = vpop.f32.mrb[47].mxu0  ;;  %2711 = vmatpush3.bf16.msra.mxu0 %v4053_v47  ;;  %v1762_v47 = vmul.f32 %v3030_v33, %v4001_v52  ;;  %v1763_v36 = vmul.f32 %v3036_v43, %v4012_v6  ;;  %v3038_v51 = vpop.eup %3037  ;;  %v508_v6 = vld [vmem:[#allocation11 + $0x68] sm:$0xff] }
 0x4f6   : > { %v1267_v40 = vpack.c.bf16 %v1233_v59, %v1230_v35  ;;  %2712 = vmatprep.subr.bf16.mxu0 %v4057_v18  ;;  %v3040_v26 = vpop.eup %3039  ;;  %v517_v58 = vpack.c.bf16 %v508_v6, %v507_v56 }
 0x4f7   : > { %v1776_v23 = vpack.c.bf16 %v1762_v47, %v1761_v19  ;;  %v1777_v12 = vpack.c.bf16 %v1764_v14, %v1763_v36  ;;  %v1765_v52 = vmul.f32 %v3040_v26, %v4003_v57 }
 0x4f8   : > { %2664 = vmatprep.mubr.msk.bf16.mxu0 %vm834_vm0, %v1267_v40 }
 0x4f9   : > { %2665 = vmatmul.mubr.msk.bf16.gmra.mrb[60].mxu0 %vm834_vm0, %v1268_v49 }
 0x4fa   : > { %2713 = vmatpush3.bf16.msra.mxu0 %v4057_v18  ;;  %2716 = vmatprep.mubr.bf16.mxu0 %v1775_v8  ;;  %v1766_v18 = vmul.f32 %v3038_v51, %v4024_v4  ;;  %v509_v4 = vld [vmem:[#allocation11 + $0x70] sm:$0xff] }
 0x4fb   : > { %2714 = vmatprep.subr.bf16.mxu0 %v4080_v15  ;;  %v518_v57 = vpack.c.bf16 %v510_v27, %v509_v4 }
 0x4fc   : > { %v1778_v25 = vpack.c.bf16 %v1766_v18, %v1765_v52 }
 0x4fe   : > { %2715 = vmatpush3.bf16.msra.mxu0 %v4080_v15  ;;  %v516_v15 = vpack.c.bf16 %v506_v37, %v505_v54 }
 0x4ff   : > { %2732 = vmatprep.subr.bf16.mxu0 %v515_v44 }
 0x501   : > { %2717 = vmatmul.mubr.bf16.vlgmr.msra.gmra.mrb[64].mxu0 %v1776_v23 }
 0x502   : > { %2720 = vmatprep.mubr.bf16.mxu0 %v1777_v12  ;;  %2733 = vmatpush3.bf16.msra.mxu0 %v515_v44 }
 0x503   : > { %2734 = vmatprep.subr.bf16.mxu0 %v516_v15 }
 0x506   : > { %2735 = vmatpush3.bf16.msra.mxu0 %v516_v15 }
 0x507   : > { %2736 = vmatprep.subr.bf16.mxu0 %v517_v58 }
 0x509   : > { %2721 = vmatmul.mubr.bf16.gmra.mrb[68].mxu0 %v1778_v25 }
 0x50a   : > { %2737 = vmatpush3.bf16.msra.mxu0 %v517_v58 }
 0x50b   : > { %2738 = vmatprep.subr.bf16.mxu0 %v518_v57 }
 0x50e   : > { %2739 = vmatpush3.bf16.msra.mxu0 %v518_v57 }
 0x5ae   : > { %v2726_v30 = vpop.f32.mrb[48].mxu1 }
 0x5af   : > { %v1881_v63 = vpop.f32.mrb[49].mxu1 }
 0x5b0   : > { %v2727_v28 = vpop.f32.mrb[50].mxu1 }
 0x5b1   : > { %v1933_v60 = vpack.c.bf16 %v2727_v28, %v2726_v30  ;;  %v1884_v55 = vpop.f32.mrb[51].mxu1 }
 0x5b2   : > { %v1932_v17 = vpack.c.bf16 %v1884_v55, %v1881_v63 }
 0x5b6   : > { %v2730_v13 = vpop.f32.mrb[52].mxu1 }
 0x5b7   : > { %v1897_v61 = vpop.f32.mrb[53].mxu1 }
 0x5b8   : > { %v2731_v31 = vpop.f32.mrb[54].mxu1 }
 0x5b9   : > { %v1935_v3 = vpack.c.bf16 %v2731_v31, %v2730_v13  ;;  %v1900_v41 = vpop.f32.mrb[55].mxu1 }
 0x5ba   : > { %v1934_v5 = vpack.c.bf16 %v1900_v41, %v1897_v61 }
 0x5d4   : > { %v2718_v10 = vpop.f32.mrb[64].mxu0 }
 0x5d5   : > { %v1849_v1 = vpop.f32.mrb[65].mxu0 }
 0x5d6   : > { %v2719_v20 = vpop.f32.mrb[66].mxu0 }
 0x5d7   : > { %v1929_v45 = vpack.c.bf16 %v2719_v20, %v2718_v10  ;;  %v1852_v11 = vpop.f32.mrb[67].mxu0 }
 0x5d8   : > { %v1928_v16 = vpack.c.bf16 %v1852_v11, %v1849_v1 }
 0x5da   : > { %2740 = vmatprep.mubr.msk.bf16.mxu0 %vm834_vm0, %v1928_v16 }
 0x5db   : > { %2741 = vmatmul.mubr.msk.bf16.vlgmr.msra.gmra.mrb[48].mxu0 %vm834_vm0, %v1929_v45 }
 0x5dc   : > { %v2722_v50 = vpop.f32.mrb[68].mxu0 }
 0x5dd   : > { %v1865_v9 = vpop.f32.mrb[69].mxu0 }
 0x5de   : > { %v2723_v29 = vpop.f32.mrb[70].mxu0 }
 0x5df   : > { %v1931_v21 = vpack.c.bf16 %v2723_v29, %v2722_v50  ;;  %v1868_v22 = vpop.f32.mrb[71].mxu0 }
 0x5e0   : > { %v1930_v2 = vpack.c.bf16 %v1868_v22, %v1865_v9 }
 0x5e2   : > { %2744 = vmatprep.mubr.msk.bf16.mxu0 %vm834_vm0, %v1930_v2 }
 0x5e3   : > { %2745 = vmatmul.mubr.msk.bf16.gmra.mrb[52].mxu0 %vm834_vm0, %v1931_v21 }
 0x5e4   : > { %2748 = vmatprep.mubr.msk.bf16.mxu0 %vm834_vm0, %v1932_v17 }
 0x5eb   : > { %2749 = vmatmul.mubr.msk.bf16.gmra.mrb[56].mxu0 %vm834_vm0, %v1933_v60 }
 0x5ec   : > { %2752 = vmatprep.mubr.msk.bf16.mxu0 %vm834_vm0, %v1934_v5 }
 0x5f3   : > { %2753 = vmatmul.mubr.msk.bf16.gmra.mrb[60].mxu0 %vm834_vm0, %v1935_v3 }
 0x6ae   : > { %v2742_v7 = vpop.f32.mrb[48].mxu0 }
 0x6af   : > { %v2117_v32 = vadd.f32 %v2742_v7, %v2340_v53  ;;  %v1994_v42 = vpop.f32.mrb[49].mxu0 }
 0x6b0   : > { %v2115_v62 = vadd.f32 %v2340_v53, %v1994_v42  ;;  %v2743_v35 = vpop.f32.mrb[50].mxu0 }
 0x6b1   : > { %2133 = vst [vmem:[%s4139_s24 + $0x10] sm:$0xff] %v2117_v32  ;;  %v2118_v38 = vadd.f32 %v2743_v35, %v2340_v53  ;;  %v1997_v48 = vpop.f32.mrb[51].mxu0 }
 0x6b2   : > { %2131 = vst [vmem:[%s4139_s24] sm:$0xff] %v2115_v62  ;;  %v2116_v49 = vadd.f32 %v2340_v53, %v1997_v48 }
 0x6b3   : > { %2134 = vst [vmem:[%s4139_s24 + $0x18] sm:$0xff] %v2118_v38 }
 0x6b4   : > { %2132 = vst [vmem:[%s4139_s24 + $0x8] sm:$0xff] %v2116_v49 }
 0x6b6   : > { %v2746_v59 = vpop.f32.mrb[52].mxu0 }
 0x6b7   : > { %v2121_v40 = vadd.f32 %v2746_v59, %v2340_v53  ;;  %v2010_v39 = vpop.f32.mrb[53].mxu0 }
 0x6b8   : > { %v2119_v33 = vadd.f32 %v2340_v53, %v2010_v39  ;;  %v2747_v8 = vpop.f32.mrb[54].mxu0 }
 0x6b9   : > { %2137 = vst [vmem:[%s4139_s24 + $0x30] sm:$0xff] %v2121_v40  ;;  %v2122_v24 = vadd.f32 %v2747_v8, %v2340_v53  ;;  %v2013_v0 = vpop.f32.mrb[55].mxu0 }
 0x6ba   : > { %2135 = vst [vmem:[%s4139_s24 + $0x20] sm:$0xff] %v2119_v33  ;;  %v2120_v43 = vadd.f32 %v2340_v53, %v2013_v0 }
 0x6bb   : > { %2138 = vst [vmem:[%s4139_s24 + $0x38] sm:$0xff] %v2122_v24 }
 0x6bc   : > { %2136 = vst [vmem:[%s4139_s24 + $0x28] sm:$0xff] %v2120_v43 }
 0x6be   : > { %v2750_v47 = vpop.f32.mrb[56].mxu0 }
 0x6bf   : > { %v2125_v14 = vadd.f32 %v2750_v47, %v2340_v53  ;;  %v2026_v19 = vpop.f32.mrb[57].mxu0 }
 0x6c0   : > { %v2123_v36 = vadd.f32 %v2340_v53, %v2026_v19  ;;  %v2751_v23 = vpop.f32.mrb[58].mxu0 }
 0x6c1   : > { %2141 = vst [vmem:[%s4139_s24 + $0x50] sm:$0xff] %v2125_v14  ;;  %v2126_v51 = vadd.f32 %v2751_v23, %v2340_v53  ;;  %v2029_v12 = vpop.f32.mrb[59].mxu0 }
 0x6c2   : > { %2139 = vst [vmem:[%s4139_s24 + $0x40] sm:$0xff] %v2123_v36  ;;  %v2124_v26 = vadd.f32 %v2340_v53, %v2029_v12 }
 0x6c3   : > { %2142 = vst [vmem:[%s4139_s24 + $0x58] sm:$0xff] %v2126_v51 }
 0x6c4   : > { %2140 = vst [vmem:[%s4139_s24 + $0x48] sm:$0xff] %v2124_v26 }
 0x6c6   : > { %v2754_v18 = vpop.f32.mrb[60].mxu0 }
 0x6c7   : > { %v2129_v52 = vadd.f32 %v2754_v18, %v2340_v53  ;;  %v2042_v25 = vpop.f32.mrb[61].mxu0 }
 0x6c8   : > { %v2127_v46 = vadd.f32 %v2340_v53, %v2042_v25  ;;  %v2755_v34 = vpop.f32.mrb[62].mxu0 }
 0x6c9   : > { %2145 = vst [vmem:[%s4139_s24 + $0x70] sm:$0xff] %v2129_v52  ;;  %v2130_v54 = vadd.f32 %v2755_v34, %v2340_v53  ;;  %v2045_v44 = vpop.f32.mrb[63].mxu0 }
 0x6ca   : > { %2143 = vst [vmem:[%s4139_s24 + $0x60] sm:$0xff] %v2127_v46  ;;  %v2128_v37 = vadd.f32 %v2340_v53, %v2045_v44 }
 0x6cb   : > { %2146 = vst [vmem:[%s4139_s24 + $0x78] sm:$0xff] %v2130_v54 }
 0x6cc   : > { %2144 = vst [vmem:[%s4139_s24 + $0x68] sm:$0xff] %v2128_v37 }
 0x6cd   : > { %3202 = shalt.err (!%p3199_p11)
}
 0x6ce   : > { %s3203_s28 = scalar_lea.hbm %s4159_s29, 2048  ;;  %s3207_s10 = scalar_lea.hbm %s4258_s27, 4096 }
 0x6cf   : > { %p3204_p3 = scmp.ne.s32.totalorder %s4159_s29, %s3203_s28  ;;  %p3208_p6 = scmp.lt.u32.totalorder %s4159_s29, %s4258_s27 }
 0x6d0   : > { %p3209_p4 = scmp.lt.u32.totalorder %s3207_s10, %s3203_s28  ;;  %p3211_p8 = scmp.lt.u32.totalorder %s3203_s28, %s4159_s29 }
 0x6d1   : > { %p3205_p13 = pnand %p3204_p3, %p3514_p9 }
 0x6d2   : > { %p3210_p5 = por %p3209_p4, %p3208_p6 }
 0x6d3   : > { %p3206_p10 = pneg %p3205_p13 }
 0x6d4   : > { %p3212_p7 = por %p3211_p8, %p3210_p5 }
 0x6d6   : > { %p3213_p12 = pnand %p3212_p7, %p3206_p10 }
 0x6d8   : > { %3216 = shalt.err (!%p3213_p12)
}
 0x6d9   : > { %s3291_s16 = smov 128   ;;  %s3292_s19 = smov 8  }
 0x6da   : > { %2822 = dma.vmem_to_hbm [thread:$0]  (%p3514_p9), %s4161_s18, 2048, %s4159_s29, %s2148_s11, %s3291_s16, %s3291_s16, %s3292_s19  }
 0x6db PF: > { %s4259_s8 = sld [smem:[#allocation17_spill]]  ;;  %s4260_s13 = sld [smem:[#allocation20_spill]] }
 0x6dc   : > { %p4262_p1 = scmp.ge.s32.totalorder %s3279_s26, 2 }
 0x6e1   : > { %s2176_s21 = sand.u32 1, %s4259_s8   ;;  %p4261_p0 = scmp.ne.s32.totalorder %s4260_s13, 0 }
 0x6e2   : > { %s2177_s1 = scalar_lea.sflag [#allocation5], %s2176_s21 }
 0x6e3   : > { %p2842_p2 = pnand %p4262_p1, %p4261_p0 }
 0x6e5   : > { %3254 = dma.done.wait (!%p2842_p2), %s2177_s1, 2048  }
 0x6e6   : > { %3256 = vsyncadd (!%p2842_p2), %s2177_s1, 4294965248  ;;  %s24_s26 = sadd.s32 1, %s3279_s26   ;;  %s4263_s21 = smov %s3263_s22 }
 0x6e7   : > { %p21_p11 = scmp.ge.s32.totalorder %s24_s26, 4   ;;  %s4264_s22 = smov %s3267_s23 }
 0x6e8   : > { %s4265_s23 = smov %s3526_s15  ;;  %s4266_s24 = smov %s3275_s25 }
 0x6e9   : > { %s4267_s25 = smov %s4269_s12  ;;  %23 = sbr.rel (!%p21_p11) target bundleno = 12 (0xc), region = 117 }
 0x6f0   :  { %2182 = vsyncpa [#allocation4], 1 }
 0x6f1   :  { %2184 = vsyncpa [#allocation4 + $0x1], 1 }
 0x6f2   :  { %2185 = vsyncpa [#allocation7], 1 }
 0x6f3   :  { %2186 = vsyncpa [#allocation10], 1 }
 0x6f4   :  { %2187 = vsyncpa [#allocation5], 1 }
 0x6f5   :  { %2189 = vsyncpa [#allocation5 + $0x1], 1 }

</bundles_post_ra>
